<compile_context>
chip_gen: v7x
topology: tpu7x:2x2x1
jax: 0.10.0
libtpu: 0.0.40
codegen_flags: <defaults>
</compile_context>

<pallas_src>
import jax
import jax.numpy as jnp
from jax.experimental import pallas as pl
from jax.experimental.pallas import tpu as pltpu


# ----------------------------------------------------------------------------
# Fused forward body: conv3x3 (single MXU matmul) + BN + ReLU + GAP + Linear
# ----------------------------------------------------------------------------
def _forward_logits(x_ref, wconv_ref, scale_ref, bias_ref, fcw_ref, fcb_ref):
    # x_ref    : (NB, H+2, W+2, Cin)  zero-padded NHWC block, f32
    # wconv_ref: (9*Cin, Cout)        conv weights, rows ordered [kh, kw, cin], bf16
    # scale_ref: (1, Cout)            folded BN scale, f32
    # bias_ref : (1, Cout)            folded BN bias, f32
    # fcw_ref  : (Cout, K)  f32 ; fcb_ref : (1, K) f32
    # returns logits (NB, K) f32
    NB = x_ref.shape[0]
    H = x_ref.shape[1] - 2
    W = x_ref.shape[2] - 2
    Cin = x_ref.shape[3]
    Cout = wconv_ref.shape[1]
    M = NB * H * W

    # im2col: 9 shifted windows concatenated along the channel (lane) axis.
    patches = []
    for kh in range(3):                            # static unrolled 3x3 taps
        for kw in range(3):
            patches.append(x_ref[:, kh:kh + H, kw:kw + W, :].reshape(M, Cin))
    cols = jnp.concatenate(patches, axis=-1).astype(jnp.bfloat16)   # (M, 9*Cin)

    # single MXU matmul (bf16 inputs, f32 accumulation)
    conv = jnp.dot(cols, wconv_ref[...], preferred_element_type=jnp.float32)  # (M, Cout)

    # folded BN + ReLU in f32 on the VPU
    y = jnp.maximum(conv * scale_ref[...] + bias_ref[...], 0.0)

    # global average pool (sum over the H*W sublane dim) then batched linear classifier
    pooled = jnp.sum(y.reshape(NB, H * W, Cout), axis=1) * (1.0 / float(H * W))   # (NB, Cout)
    logits = jnp.dot(pooled, fcw_ref[...], preferred_element_type=jnp.float32) + fcb_ref[...]
    return logits                                                    # (NB, K)


# ----------------------------------------------------------------------------
# Inference path: prob = sigmoid(logits)        (simple_test)
# ----------------------------------------------------------------------------
def _infer_kernel(x_ref, wconv_ref, scale_ref, bias_ref, fcw_ref, fcb_ref, prob_ref):
    logits = _forward_logits(x_ref, wconv_ref, scale_ref, bias_ref, fcw_ref, fcb_ref)
    NB, K = logits.shape
    prob_ref[...] = jax.nn.sigmoid(logits).reshape(NB, 1, K)


# ----------------------------------------------------------------------------
# Training path: per-block partial sum of weights * BCE_with_logits(logits, gt)
# ----------------------------------------------------------------------------
def _train_kernel(x_ref, wconv_ref, scale_ref, bias_ref, fcw_ref, fcb_ref,
                  gt_ref, wt_ref, loss_ref):
    logits = _forward_logits(x_ref, wconv_ref, scale_ref, bias_ref, fcw_ref, fcb_ref)
    NB, K = logits.shape
    y = gt_ref[...].reshape(NB, K)
    w = wt_ref[...].reshape(NB, K)
    z = logits
    # numerically-stable BCE with logits (formula proven to lower on Mosaic)
    elem = jnp.maximum(z, 0.0) - z * y + jnp.log(1.0 + jnp.exp(-jnp.abs(z)))
    loss_ref[...] = jnp.sum(w * elem).reshape(1, 1, 1)


# ----------------------------------------------------------------------------
# Wrappers
# ----------------------------------------------------------------------------
def _prep_input(img_nchw):
    # NCHW (PyTorch) -> NHWC + zero-pad halo; XLA fuses these into one layout pass.
    # TODO(synk): fold the transpose + halo into the kernel's own reads to drop this
    # extra HBM pass at large scale.
    x = jnp.transpose(img_nchw, (0, 2, 3, 1))
    return jnp.pad(x, ((0, 0), (1, 1), (1, 1), (0, 0)))


def strongbaseline_probs(img_nchw, w_r, scale2, bias2, fc_w, fc_b2, *, nb=1):
    xp = _prep_input(img_nchw)
    N, Hp, Wp, Cin = xp.shape
    Cout = w_r.shape[1]
    K = fc_w.shape[1]
    assert N % nb == 0
    G = N // nb
    probs3 = pl.pallas_call(
        _infer_kernel,
        out_shape=jax.ShapeDtypeStruct((N, 1, K), jnp.float32),
        grid=(G,),
        in_specs=[
            pl.BlockSpec((nb, Hp, Wp, Cin), lambda n: (n, 0, 0, 0)),
            pl.BlockSpec((w_r.shape[0], Cout), lambda n: (0, 0)),
            pl.BlockSpec((1, Cout), lambda n: (0, 0)),
            pl.BlockSpec((1, Cout), lambda n: (0, 0)),
            pl.BlockSpec((Cout, K), lambda n: (0, 0)),
            pl.BlockSpec((1, K), lambda n: (0, 0)),
        ],
        out_specs=pl.BlockSpec((nb, 1, K), lambda n: (n, 0, 0)),
        compiler_params=pltpu.CompilerParams(dimension_semantics=("parallel",)),
    )(xp, w_r, scale2, bias2, fc_w, fc_b2)
    return probs3[:, 0, :]


def strongbaseline_loss(img_nchw, gt, wts, w_r, scale2, bias2, fc_w, fc_b2, *, nb=1):
    xp = _prep_input(img_nchw)
    N, Hp, Wp, Cin = xp.shape
    Cout = w_r.shape[1]
    K = fc_w.shape[1]
    assert N % nb == 0
    G = N // nb
    gt3 = gt.astype(jnp.float32).reshape(N, 1, K)
    wt3 = wts.astype(jnp.float32).reshape(N, 1, K)
    parts = pl.pallas_call(
        _train_kernel,
        out_shape=jax.ShapeDtypeStruct((G, 1, 1), jnp.float32),
        grid=(G,),
        in_specs=[
            pl.BlockSpec((nb, Hp, Wp, Cin), lambda n: (n, 0, 0, 0)),
            pl.BlockSpec((w_r.shape[0], Cout), lambda n: (0, 0)),
            pl.BlockSpec((1, Cout), lambda n: (0, 0)),
            pl.BlockSpec((1, Cout), lambda n: (0, 0)),
            pl.BlockSpec((Cout, K), lambda n: (0, 0)),
            pl.BlockSpec((1, K), lambda n: (0, 0)),
            pl.BlockSpec((nb, 1, K), lambda n: (n, 0, 0)),
            pl.BlockSpec((nb, 1, K), lambda n: (n, 0, 0)),
        ],
        out_specs=pl.BlockSpec((1, 1, 1), lambda n: (n, 0, 0)),
        compiler_params=pltpu.CompilerParams(dimension_semantics=("parallel",)),
    )(xp, w_r, scale2, bias2, fc_w, fc_b2, gt3, wt3)
    # mean over all N*K weighted elements (same reduction as the previous version).
    # TODO(synk): the registry CEL_Sigmoid may normalize by batch or sum(weights);
    # change the divisor here if the real config does.
    return jnp.sum(parts) / float(N * K)


# ----------------------------------------------------------------------------
# StrongBaseline module (synthetic, deterministically initialized)
# ----------------------------------------------------------------------------
class StrongBaseline:
    def __init__(self, c_in, c_feat, num_attrs, key):
        k1, k2 = jax.random.split(key, 2)
        # backbone: conv3x3 + BN (folded) + ReLU
        self.conv_w = 0.1 * jax.random.normal(k1, (3, 3, c_in, c_feat), jnp.float32)
        gamma = jnp.ones((c_feat,), jnp.float32)
        beta = jnp.zeros((c_feat,), jnp.float32)
        running_mean = jnp.zeros((c_feat,), jnp.float32)
        running_var = jnp.ones((c_feat,), jnp.float32)
        eps = 1e-5
        bn_scale = gamma / jnp.sqrt(running_var + eps)
        bn_bias = beta - running_mean * bn_scale
        # classifier: Linear(c_feat, num_attrs)
        self.fc_w = 0.05 * jax.random.normal(k2, (c_feat, num_attrs), jnp.float32)
        self.fc_b = jnp.zeros((num_attrs,), jnp.float32)
        # kernel-ready parameter layouts
        self.w_r = self.conv_w.reshape(9 * c_in, c_feat).astype(jnp.bfloat16)  # [kh,kw,cin] rows
        self.scale2 = bn_scale.reshape(1, c_feat)
        self.bias2 = bn_bias.reshape(1, c_feat)
        self.fc_b2 = self.fc_b.reshape(1, num_attrs)

    def forward_train(self, img, gt_label, weights):
        loss = strongbaseline_loss(img, gt_label, weights,
                                   self.w_r, self.scale2, self.bias2,
                                   self.fc_w, self.fc_b2)
        return {"loss": loss}

    def simple_test(self, img, gt_label):
        prob = strongbaseline_probs(img, self.w_r, self.scale2, self.bias2,
                                    self.fc_w, self.fc_b2)
        return {"prob": prob, "gt_label": gt_label}

    def forward(self, return_loss=True, **kwargs):
        if return_loss:
            return self.forward_train(kwargs["img"], kwargs["gt_label"], kwargs["weights"])
        return self.simple_test(kwargs["img"], kwargs["gt_label"])

    # TODO(synk): train_step/val_step optimizer plumbing and aug_test have no
    # kernel-level equivalent; only the forward compute paths are implemented.


if __name__ == "__main__":
    key = jax.random.PRNGKey(0)
    k_img, k_lbl, k_params = jax.random.split(key, 3)

    N, Cin, H, W = 2, 4, 16, 16
    Cfeat, num_attrs = 32, 8

    img = jax.random.normal(k_img, (N, Cin, H, W), jnp.float32)          # NCHW input
    gt_label = (jax.random.uniform(k_lbl, (N, num_attrs)) > 0.5).astype(jnp.float32)
    weights = jnp.ones((N, num_attrs), jnp.float32)

    model = StrongBaseline(Cin, Cfeat, num_attrs, k_params)

    # inference path (simple_test): prob = sigmoid(classifier(backbone(img)))
    result = model.forward(return_loss=False, img=img, gt_label=gt_label)
    jax.block_until_ready(result["prob"])

    # training path (forward_train): weighted BCE-with-logits loss
    losses = model.forward(return_loss=True, img=img, gt_label=gt_label, weights=weights)
    jax.block_until_ready(losses["loss"])

    print("KERNEL_OK")
</pallas_src>

<mosaic_0001>
module attributes {stable_mosaic.version = 11 : i64} {
  func.func @_infer_kernel(%arg0: i32, %arg1: memref<1x18x18x4xf32, #tpu.memory_space<vmem>>, %arg2: memref<36x32xbf16, #tpu.memory_space<vmem>>, %arg3: memref<1x32xf32, #tpu.memory_space<vmem>>, %arg4: memref<1x32xf32, #tpu.memory_space<vmem>>, %arg5: memref<32x8xf32, #tpu.memory_space<vmem>>, %arg6: memref<1x8xf32, #tpu.memory_space<vmem>>, %arg7: memref<1x1x8xf32, #tpu.memory_space<vmem>>) attributes {dimension_semantics = [#tpu.dimension_semantics<parallel>], iteration_bounds = array<i64: 2>, scalar_prefetch = 0 : i64, scratch_operands = 0 : i64, tpu.core_type = #tpu.core_type<tc>, window_params = [{transform_indices = @transform_0, window_bounds = array<i64: 1, 18, 18, 4>}, {pipeline_mode = #tpu.pipeline_mode<synchronous>, transform_indices = @transform_1, window_bounds = array<i64: 36, 32>}, {pipeline_mode = #tpu.pipeline_mode<synchronous>, transform_indices = @transform_2, window_bounds = array<i64: 1, 32>}, {pipeline_mode = #tpu.pipeline_mode<synchronous>, transform_indices = @transform_3, window_bounds = array<i64: 1, 32>}, {pipeline_mode = #tpu.pipeline_mode<synchronous>, transform_indices = @transform_4, window_bounds = array<i64: 32, 8>}, {pipeline_mode = #tpu.pipeline_mode<synchronous>, transform_indices = @transform_5, window_bounds = array<i64: 1, 8>}, {transform_indices = @transform_6, window_bounds = array<i64: 1, 1, 8>}]} {
    %c0 = arith.constant 0 : index
    %c0_0 = arith.constant 0 : index
    %c0_1 = arith.constant 0 : index
    %c0_2 = arith.constant 0 : index
    %0 = vector.load %arg1[%c0, %c0_0, %c0_1, %c0_2] : memref<1x18x18x4xf32, #tpu.memory_space<vmem>>, vector<1x16x16x4xf32>
    %1 = vector.shape_cast %0 : vector<1x16x16x4xf32> to vector<256x4xf32>
    %c0_3 = arith.constant 0 : index
    %c0_4 = arith.constant 0 : index
    %c1 = arith.constant 1 : index
    %c0_5 = arith.constant 0 : index
    %2 = vector.load %arg1[%c0_3, %c0_4, %c1, %c0_5] : memref<1x18x18x4xf32, #tpu.memory_space<vmem>>, vector<1x16x16x4xf32>
    %3 = vector.shape_cast %2 : vector<1x16x16x4xf32> to vector<256x4xf32>
    %c0_6 = arith.constant 0 : index
    %c0_7 = arith.constant 0 : index
    %c2 = arith.constant 2 : index
    %c0_8 = arith.constant 0 : index
    %4 = vector.load %arg1[%c0_6, %c0_7, %c2, %c0_8] : memref<1x18x18x4xf32, #tpu.memory_space<vmem>>, vector<1x16x16x4xf32>
    %5 = vector.shape_cast %4 : vector<1x16x16x4xf32> to vector<256x4xf32>
    %c0_9 = arith.constant 0 : index
    %c1_10 = arith.constant 1 : index
    %c0_11 = arith.constant 0 : index
    %c0_12 = arith.constant 0 : index
    %6 = vector.load %arg1[%c0_9, %c1_10, %c0_11, %c0_12] : memref<1x18x18x4xf32, #tpu.memory_space<vmem>>, vector<1x16x16x4xf32>
    %7 = vector.shape_cast %6 : vector<1x16x16x4xf32> to vector<256x4xf32>
    %c0_13 = arith.constant 0 : index
    %c1_14 = arith.constant 1 : index
    %c1_15 = arith.constant 1 : index
    %c0_16 = arith.constant 0 : index
    %8 = vector.load %arg1[%c0_13, %c1_14, %c1_15, %c0_16] : memref<1x18x18x4xf32, #tpu.memory_space<vmem>>, vector<1x16x16x4xf32>
    %9 = vector.shape_cast %8 : vector<1x16x16x4xf32> to vector<256x4xf32>
    %c0_17 = arith.constant 0 : index
    %c1_18 = arith.constant 1 : index
    %c2_19 = arith.constant 2 : index
    %c0_20 = arith.constant 0 : index
    %10 = vector.load %arg1[%c0_17, %c1_18, %c2_19, %c0_20] : memref<1x18x18x4xf32, #tpu.memory_space<vmem>>, vector<1x16x16x4xf32>
    %11 = vector.shape_cast %10 : vector<1x16x16x4xf32> to vector<256x4xf32>
    %c0_21 = arith.constant 0 : index
    %c2_22 = arith.constant 2 : index
    %c0_23 = arith.constant 0 : index
    %c0_24 = arith.constant 0 : index
    %12 = vector.load %arg1[%c0_21, %c2_22, %c0_23, %c0_24] : memref<1x18x18x4xf32, #tpu.memory_space<vmem>>, vector<1x16x16x4xf32>
    %13 = vector.shape_cast %12 : vector<1x16x16x4xf32> to vector<256x4xf32>
    %c0_25 = arith.constant 0 : index
    %c2_26 = arith.constant 2 : index
    %c1_27 = arith.constant 1 : index
    %c0_28 = arith.constant 0 : index
    %14 = vector.load %arg1[%c0_25, %c2_26, %c1_27, %c0_28] : memref<1x18x18x4xf32, #tpu.memory_space<vmem>>, vector<1x16x16x4xf32>
    %15 = vector.shape_cast %14 : vector<1x16x16x4xf32> to vector<256x4xf32>
    %c0_29 = arith.constant 0 : index
    %c2_30 = arith.constant 2 : index
    %c2_31 = arith.constant 2 : index
    %c0_32 = arith.constant 0 : index
    %16 = vector.load %arg1[%c0_29, %c2_30, %c2_31, %c0_32] : memref<1x18x18x4xf32, #tpu.memory_space<vmem>>, vector<1x16x16x4xf32>
    %17 = vector.shape_cast %16 : vector<1x16x16x4xf32> to vector<256x4xf32>
    %18 = tpu.concatenate %1, %3, %5, %7, %9, %11, %13, %15, %17 in 1 : vector<256x4xf32>, vector<256x4xf32>, vector<256x4xf32>, vector<256x4xf32>, vector<256x4xf32>, vector<256x4xf32>, vector<256x4xf32>, vector<256x4xf32>, vector<256x4xf32> -> vector<256x36xf32>
    %19 = arith.truncf %18 : vector<256x36xf32> to vector<256x36xbf16>
    %c0_33 = arith.constant 0 : index
    %c0_34 = arith.constant 0 : index
    %20 = vector.load %arg2[%c0_33, %c0_34] : memref<36x32xbf16, #tpu.memory_space<vmem>>, vector<36x32xbf16>
    %cst = arith.constant dense<0.000000e+00> : vector<256x32xf32>
    %21 = tpu.matmul %19, %20, %cst {dimension_numbers = #tpu.dot_dimension_numbers<[1], [0], [0], [1], [0, 0, 1, 1], [], []>} : vector<256x36xbf16>, vector<36x32xbf16>, vector<256x32xf32> -> vector<256x32xf32>
    %c0_35 = arith.constant 0 : index
    %c0_36 = arith.constant 0 : index
    %22 = vector.load %arg3[%c0_35, %c0_36] : memref<1x32xf32, #tpu.memory_space<vmem>>, vector<1x32xf32>
    %23 = vector.broadcast %22 : vector<1x32xf32> to vector<256x32xf32>
    %24 = arith.mulf %21, %23 : vector<256x32xf32>
    %c0_37 = arith.constant 0 : index
    %c0_38 = arith.constant 0 : index
    %25 = vector.load %arg4[%c0_37, %c0_38] : memref<1x32xf32, #tpu.memory_space<vmem>>, vector<1x32xf32>
    %26 = vector.broadcast %25 : vector<1x32xf32> to vector<256x32xf32>
    %27 = arith.addf %24, %26 : vector<256x32xf32>
    %cst_39 = arith.constant 0.000000e+00 : f32
    %28 = vector.broadcast %cst_39 : f32 to vector<256x32xf32>
    %29 = arith.maximumf %27, %28 : vector<256x32xf32>
    %30 = vector.shape_cast %29 : vector<256x32xf32> to vector<1x256x32xf32>
    %cst_40 = arith.constant dense<0.000000e+00> : vector<1x32xf32>
    %31 = vector.multi_reduction <add>, %30, %cst_40 [1] : vector<1x256x32xf32> to vector<1x32xf32>
    %cst_41 = arith.constant 3.906250e-03 : f32
    %32 = vector.broadcast %cst_41 : f32 to vector<1x32xf32>
    %33 = arith.mulf %31, %32 : vector<1x32xf32>
    %c0_42 = arith.constant 0 : index
    %c0_43 = arith.constant 0 : index
    %34 = vector.load %arg5[%c0_42, %c0_43] : memref<32x8xf32, #tpu.memory_space<vmem>>, vector<32x8xf32>
    %cst_44 = arith.constant dense<0.000000e+00> : vector<1x8xf32>
    %35 = tpu.matmul %33, %34, %cst_44 {dimension_numbers = #tpu.dot_dimension_numbers<[1], [0], [0], [1], [0, 0, 1, 1], [], []>} : vector<1x32xf32>, vector<32x8xf32>, vector<1x8xf32> -> vector<1x8xf32>
    %c0_45 = arith.constant 0 : index
    %c0_46 = arith.constant 0 : index
    %36 = vector.load %arg6[%c0_45, %c0_46] : memref<1x8xf32, #tpu.memory_space<vmem>>, vector<1x8xf32>
    %37 = arith.addf %35, %36 : vector<1x8xf32>
    %38 = arith.negf %37 : vector<1x8xf32>
    %39 = math.exp %38 : vector<1x8xf32>
    %cst_47 = arith.constant 1.000000e+00 : f32
    %40 = vector.broadcast %cst_47 : f32 to vector<1x8xf32>
    %41 = arith.addf %40, %39 : vector<1x8xf32>
    %42 = arith.divf %40, %41 : vector<1x8xf32>
    %43 = vector.shape_cast %42 : vector<1x8xf32> to vector<1x1x8xf32>
    %c0_48 = arith.constant 0 : index
    %c0_49 = arith.constant 0 : index
    %c0_50 = arith.constant 0 : index
    %44 = vector.load %arg7[%c0_48, %c0_49, %c0_50] : memref<1x1x8xf32, #tpu.memory_space<vmem>>, vector<1x1x8xf32>
    tpu.vector_store %arg7[%c0_48, %c0_49, %c0_50], %43 {strides = array<i32>} : memref<1x1x8xf32, #tpu.memory_space<vmem>>, vector<1x1x8xf32>,
    return
  }
  func.func @transform_0(%arg0: i32) -> (i32, i32, i32, i32) {
    %c0_i32 = arith.constant 0 : i32
    %c0_i32_0 = arith.constant 0 : i32
    %c0_i32_1 = arith.constant 0 : i32
    %c0_i32_2 = arith.constant 0 : i32
    return %arg0, %c0_i32, %c0_i32_0, %c0_i32_1 : i32, i32, i32, i32
  }
  func.func @transform_1(%arg0: i32) -> (i32, i32) {
    %c0_i32 = arith.constant 0 : i32
    %c0_i32_0 = arith.constant 0 : i32
    %c0_i32_1 = arith.constant 0 : i32
    return %c0_i32, %c0_i32_0 : i32, i32
  }
  func.func @transform_2(%arg0: i32) -> (i32, i32) {
    %c0_i32 = arith.constant 0 : i32
    %c0_i32_0 = arith.constant 0 : i32
    %c0_i32_1 = arith.constant 0 : i32
    return %c0_i32, %c0_i32_0 : i32, i32
  }
  func.func @transform_3(%arg0: i32) -> (i32, i32) {
    %c0_i32 = arith.constant 0 : i32
    %c0_i32_0 = arith.constant 0 : i32
    %c0_i32_1 = arith.constant 0 : i32
    return %c0_i32, %c0_i32_0 : i32, i32
  }
  func.func @transform_4(%arg0: i32) -> (i32, i32) {
    %c0_i32 = arith.constant 0 : i32
    %c0_i32_0 = arith.constant 0 : i32
    %c0_i32_1 = arith.constant 0 : i32
    return %c0_i32, %c0_i32_0 : i32, i32
  }
  func.func @transform_5(%arg0: i32) -> (i32, i32) {
    %c0_i32 = arith.constant 0 : i32
    %c0_i32_0 = arith.constant 0 : i32
    %c0_i32_1 = arith.constant 0 : i32
    return %c0_i32, %c0_i32_0 : i32, i32
  }
  func.func @transform_6(%arg0: i32) -> (i32, i32, i32) {
    %c0_i32 = arith.constant 0 : i32
    %c0_i32_0 = arith.constant 0 : i32
    %c0_i32_1 = arith.constant 0 : i32
    return %arg0, %c0_i32, %c0_i32_0 : i32, i32, i32
  }
}

</mosaic_0001>

<bundles_post_ra>
// kernel: tpu_custom_call.1
= control target key start
LH: loop header
LB: loop body
LE: loop exit
PB: predicated region body
PF: predicated region fallthrough
CT: control target
= control target key end

     0   :  { %11 = vsyncpa [#allocation3], 0  ;;  %s4623_s0 = inlined_call_operand.vmem [shape: f32[2,18,18,4], index: 0, kind: input, shape index: {}]   ;;  %s4624_s1 = inlined_call_operand.vmem [shape: bf16[36,32], index: 1, kind: input, shape index: {}]   ;;  %s4625_s2 = inlined_call_operand.vmem [shape: f32[1,32], index: 2, kind: input, shape index: {}]   ;;  %s4626_s3 = inlined_call_operand.vmem [shape: f32[1,32], index: 3, kind: input, shape index: {}]   ;;  %s4627_s4 = inlined_call_operand.vmem [shape: f32[32,8], index: 4, kind: input, shape index: {}]   ;;  %s4628_s5 = inlined_call_operand.vmem [shape: f32[1,8], index: 5, kind: input, shape index: {}]   ;;  %s4629_s6 = inlined_call_operand.hbm [shape: f32[2,1,8], index: 6, kind: output, shape index: {}]  }
   0x1   :  { %13 = vsyncpa [#allocation3 + $0x1], 0  ;;  %s3534_s21 = smov 0   ;;  %s3536_s22 = smov 0  }
   0x2   :  { %s3538_s23 = smov 0   ;;  %s3540_s24 = smov 0  }
   0x3 LB: > { %s3555_s25 = sadd.s32 4294967295, %s3485_s24   ;;  %s2412_s26 = sadd.s32 4294967294, %s3485_s24   ;;  %s3485_s24 = sphi %s3540_s24, %s4635_s24   ;;  %s3481_s23 = sphi %s3538_s23, %s4634_s23   ;;  %s3477_s22 = sphi %s3536_s22, %s4633_s22   ;;  %s3473_s21 = sphi %s3534_s21, %s4632_s21  }
   0x4   : > { %s3559_s27 = sadd.s32 1, %s3485_s24   ;;  %s157_s28 = sadd.s32 1, %s3481_s23 }
   0x5   : > { %s154_s29 = ssub.s32 %s3485_s24, %s3559_s27  ;;  %p167_p0 = scmp.ne.s32.totalorder %s3481_s23, %s3477_s22 }
   0x6   : > { %p155_p1 = scmp.eq.s32.totalorder %s154_s29, 0  ;;  %p168_p2 = scmp.eq.s32.totalorder %s3555_s25, 1 }
   0x7   : > { %p173_p3 = scmp.ne.s32.totalorder %s3477_s22, %s3473_s21  ;;  %p174_p4 = scmp.eq.s32.totalorder %s2412_s26, 1 }
   0x8   : > { %s3570_s30 = scalar_select %p155_p1, %s3481_s23, %s157_s28  }
   0x9   : > { %p3572_p5 = por %p168_p2, %p167_p0  ;;  %p3576_p6 = por %p174_p4, %p173_p3 }
   0xa   : > { %p2415_p7 = scmp.ge.s32.totalorder %s3485_s24, 1  ;;  %p215_p8 = scmp.lt.s32.totalorder %s3485_s24, 3 }
   0xc   : > { %p216_p9 = pnand %p2415_p7, %p215_p8 }
   0xd   : > { %p244_p10 = scmp.lt.s32.totalorder (!%p216_p9), %s3555_s25, 1  ;;  %s3487_s14 = smov (!%p216_p9), 8   ;;  %v3413_v29 = vld [vmem:[%s4624_s1] sm:$0xff] (!%p216_p9)   ;;  %v3414_v30 = vld [vmem:[%s4624_s1 + $0x8] sm:$0xff] (!%p216_p9)   ;;  %vm1913_vm0 = vcmask (!%p216_p9), 1041408   ;;  %vm1564_vm1 = vcmask (!%p216_p9), 31744  }
   0xe   : > { %219 = sbr.rel (%p216_p9) target bundleno = 899 (0x383), region = 44  ;;  %s3488_s15 = smov (!%p216_p9), 4   ;;  %2659 = vmatprep.subr.bf16.mxu0 (!%p216_p9), %v3413_v29  ;;  %2714 = vmatprep.subr.bf16.mxu1 (!%p216_p9), %v3413_v29  ;;  %v3415_v32 = vld [vmem:[%s4624_s1 + $0x10] ss:$0 sps:$4 sm:$0x33] (!%p216_p9)   ;;  %vm1597_vm2 = vcmask (!%p216_p9), 64512  }
   0xf   : > { %s3489_s16 = smov (!%p216_p9), 12   ;;  %s3490_s17 = smov (!%p216_p9), 16   ;;  %2660 = vmatpush3.bf16.msra.mxu0 (!%p216_p9), %v3413_v29  ;;  %2717 = vmatpush3.bf16.msra.mxu1 (!%p216_p9), %v3413_v29  ;;  %v1915_v33 = vsel (!%p216_p9), %vm1913_vm0, %v3415_v32, 0  ;;  %vm1630_vm3 = vcmask (!%p216_p9), 97280   ;;  %vm1663_vm4 = vcmask (!%p216_p9), 130048   ;;  %vm1696_vm5 = vcmask (!%p216_p9), 162816  }
  0x10   : > { %s3491_s18 = smov (!%p216_p9), 20   ;;  %s3492_s29 = smov (!%p216_p9), 24   ;;  %2661 = vmatprep.subr.bf16.mxu0 (!%p216_p9), %v3414_v30  ;;  %2715 = vmatprep.subr.bf16.mxu1 (!%p216_p9), %v3414_v30  ;;  %vm1729_vm6 = vcmask (!%p216_p9), 195584   ;;  %vm1762_vm7 = vcmask (!%p216_p9), 228352   ;;  %vm1795_vm8 = vcmask (!%p216_p9), 261120   ;;  %vm1864_vm9 = vcmask (!%p216_p9), 293888  }
  0x11   : > { %s3493_s11 = smov (!%p216_p9), 28   ;;  %s3494_s12 = smov (!%p216_p9), 32   ;;  %vm3496_vm10 = vmmov (!%p216_p9), 0   ;;  %vm2342_vm11 = vcmask (!%p216_p9), 57344  }
  0x13   : > { %2662 = vmatpush3.bf16.msra.mxu0 (!%p216_p9), %v3414_v30  ;;  %2718 = vmatpush3.bf16.msra.mxu1 (!%p216_p9), %v3414_v30 }
  0x14   : > { %2720 = vmatprep.subr.msk.bf16.mxu0 (!%p216_p9), %vm1913_vm0, %v3415_v32  ;;  %2721 = vmatprep.subr.msk.bf16.mxu1 (!%p216_p9), %vm1913_vm0, %v3415_v32 }
  0x15   : > { %s245_s9 = scalar_select %p244_p10, %s3555_s25, 1 }
  0x17   : > { %s2722_s10 = smul.u32 432, %s245_s9  ;;  %2664 = vmatpush3.bf16.msra.mxu0 %v1915_v33  ;;  %2719 = vmatpush3.bf16.msra.mxu1 %v1915_v33 }
  0x19   : > { %s3587_s13 = scalar_lea.vmem %s4623_s0, %s2722_s10 }
  0x1a   : > { %v314_v0 = vld [vmem:[%s3587_s13 + $0x2] sm:$0xff]  ;;  %v315_v1 = vld [vmem:[%s3587_s13 + $0xa] sm:$0xff]  ;;  %v316_v5 = vld [vmem:[%s3587_s13 + $0x1a] sm:$0xff] }
  0x1b   : > { %v282_v2 = vld [vmem:[%s3587_s13 + $0x1] sm:$0xff]  ;;  %v2783_v3 = vpack.i.bf16 %v315_v1, %v314_v0  ;;  %v283_v4 = vld [vmem:[%s3587_s13 + $0x9] sm:$0xff]  ;;  %v284_v8 = vld [vmem:[%s3587_s13 + $0x19] sm:$0xff] }
  0x1c   : > { %v317_v6 = vld [vmem:[%s3587_s13 + $0x22] sm:$0xff]  ;;  %v2773_v7 = vpack.i.bf16 %v283_v4, %v282_v2  ;;  %v3600_v12 = vld [vmem:[%s3587_s13 + $0x30] sm:$0xff]  ;;  %v3603_v13 = vld [vmem:[%s3587_s13 + $0x38] sm:$0xff] }
  0x1d   : > { %v285_v9 = vld [vmem:[%s3587_s13 + $0x21] sm:$0xff]  ;;  %2784 = vrot.lane.b32.xlu1 %v2783_v3, %s3487_s14  ;;  %v2788_v10 = vpack.i.bf16 %v317_v6, %v316_v5  ;;  %v3606_v14 = vld [vmem:[%s3587_s13 + $0x18] sm:$0xff]  ;;  %v2798_v16 = vpack.i.bf16 %v3603_v13, %v3600_v12  ;;  %v3629_v25 = vld [vmem:[%s3587_s13 + $0x50] sm:$0xff] }
  0x1e   : > { %2774 = vrot.lane.b32.xlu0 %v2773_v7, %s3488_s15  ;;  %v2778_v11 = vpack.i.bf16 %v285_v9, %v284_v8  ;;  %v3609_v15 = vld [vmem:[%s3587_s13 + $0x20] sm:$0xff]  ;;  %v2451_v18 = vld [vmem:[%s3587_s13 + $0x31] sm:$0xff]  ;;  %v3626_v24 = vld [vmem:[%s3587_s13 + $0x48] sm:$0xff] }
  0x1f   : > { %v2793_v17 = vpack.i.bf16 %v3609_v15, %v3606_v14  ;;  %v2452_v19 = vld [vmem:[%s3587_s13 + $0x39] sm:$0xff]  ;;  %v2828_v26 = vpack.i.bf16 %v3629_v25, %v3626_v24  ;;  %v2547_v27 = vld [vmem:[%s3587_s13 + $0x49] sm:$0xff]  ;;  %v2548_v28 = vld [vmem:[%s3587_s13 + $0x51] sm:$0xff] }
  0x20   : > { %v2808_v20 = vpack.i.bf16 %v2452_v19, %v2451_v18  ;;  %v2483_v21 = vld [vmem:[%s3587_s13 + $0x32] sm:$0xff]  ;;  %v2484_v22 = vld [vmem:[%s3587_s13 + $0x3a] sm:$0xff]  ;;  %v2838_v31 = vpack.i.bf16 %v2548_v28, %v2547_v27  ;;  %v2579_v34 = vld [vmem:[%s3587_s13 + $0x4a] sm:$0xff] }
  0x21   : > { %2789 = vrot.lane.b32.xlu1 %v2788_v10, %s3487_s14  ;;  %v2818_v23 = vpack.i.bf16 %v2484_v22, %v2483_v21  ;;  %v2580_v35 = vld [vmem:[%s3587_s13 + $0x52] sm:$0xff]  ;;  %v3657_v37 = vld [vmem:[%s3587_s13 + $0x60] sm:$0xff]  ;;  %v3660_v38 = vld [vmem:[%s3587_s13 + $0x68] sm:$0xff] }
  0x22   : > { %2779 = vrot.lane.b32.xlu0 %v2778_v11, %s3488_s15  ;;  %v2853_v36 = vpack.i.bf16 %v2580_v35, %v2579_v34  ;;  %v2878_v39 = vpack.i.bf16 %v3660_v38, %v3657_v37  ;;  %v2455_v40 = vld [vmem:[%s3587_s13 + $0x61] sm:$0xff]  ;;  %v2456_v41 = vld [vmem:[%s3587_s13 + $0x69] sm:$0xff]  ;;  %v3675_v46 = vld [vmem:[%s3587_s13 + $0x78] sm:$0xff] }
  0x23   : > { %v2888_v42 = vpack.i.bf16 %v2456_v41, %v2455_v40  ;;  %v2487_v43 = vld [vmem:[%s3587_s13 + $0x62] sm:$0xff]  ;;  %v2488_v44 = vld [vmem:[%s3587_s13 + $0x6a] sm:$0xff]  ;;  %v2551_v49 = vld [vmem:[%s3587_s13 + $0x79] sm:$0xff] }
  0x24   : > { %v2898_v45 = vpack.i.bf16 %v2488_v44, %v2487_v43  ;;  %v3678_v47 = vld [vmem:[%s3587_s13 + $0x80] sm:$0xff]  ;;  %v2427_v55 = vld [vmem:[%s3587_s13 + $0x90] sm:$0xff]  ;;  %v2428_v56 = vld [vmem:[%s3587_s13 + $0x98] sm:$0xff] }
  0x25   : > { %2799 = vrot.lane.b32.xlu1 %v2798_v16, %s3489_s16  ;;  %v2908_v48 = vpack.i.bf16 %v3678_v47, %v3675_v46  ;;  %v2552_v50 = vld [vmem:[%s3587_s13 + $0x81] sm:$0xff]  ;;  %v2958_v57 = vpack.i.bf16 %v2428_v56, %v2427_v55  ;;  %v2459_v58 = vld [vmem:[%s3587_s13 + $0x91] sm:$0xff]  ;;  %v2460_v59 = vld [vmem:[%s3587_s13 + $0x99] sm:$0xff] }
  0x26   : > { %2794 = vrot.lane.b32.xlu0 %v2793_v17, %s3489_s16  ;;  %v2918_v51 = vpack.i.bf16 %v2552_v50, %v2551_v49  ;;  %v2583_v52 = vld [vmem:[%s3587_s13 + $0x7a] sm:$0xff]  ;;  %v2584_v53 = vld [vmem:[%s3587_s13 + $0x82] sm:$0xff]  ;;  %v2968_v60 = vpack.i.bf16 %v2460_v59, %v2459_v58  ;;  %v2491_v61 = vld [vmem:[%s3587_s13 + $0x92] sm:$0xff] }
  0x27   : > { %v2933_v54 = vpack.i.bf16 %v2584_v53, %v2583_v52  ;;  %v2492_v62 = vld [vmem:[%s3587_s13 + $0x9a] sm:$0xff]  ;;  %v2523_v0 = vld [vmem:[%s3587_s13 + $0xa8] sm:$0xff]  ;;  %v2524_v1 = vld [vmem:[%s3587_s13 + $0xb0] sm:$0xff] }
  0x28   : > { %v2978_v63 = vpack.i.bf16 %v2492_v62, %v2491_v61  ;;  %v2988_v2 = vpack.i.bf16 %v2524_v1, %v2523_v0  ;;  %v2555_v3 = vld [vmem:[%s3587_s13 + $0xa9] sm:$0xff]  ;;  %v2556_v4 = vld [vmem:[%s3587_s13 + $0xb1] sm:$0xff]  ;;  %v2431_v9 = vld [vmem:[%s3587_s13 + $0xc0] sm:$0xff] }
  0x29   : > { %2809 = vrot.lane.b32.xlu1 %v2808_v20, %s3490_s17  ;;  %v2998_v5 = vpack.i.bf16 %v2556_v4, %v2555_v3  ;;  %v2587_v6 = vld [vmem:[%s3587_s13 + $0xaa] sm:$0xff]  ;;  %v2588_v7 = vld [vmem:[%s3587_s13 + $0xb2] sm:$0xff]  ;;  %v2495_v19 = vld [vmem:[%s3587_s13 + $0xc2] sm:$0xff] }
  0x2a   : > { %2804 = vrot.lane.b32.xlu0 %v2778_v11, %s3490_s17  ;;  %v3013_v8 = vpack.i.bf16 %v2588_v7, %v2587_v6  ;;  %v2464_v17 = vld [vmem:[%s3587_s13 + $0xc9] sm:$0xff]  ;;  %v2527_v22 = vld [vmem:[%s3587_s13 + $0xd8] sm:$0xff]  ;;  %v2560_v28 = vld [vmem:[%s3587_s13 + $0xe1] sm:$0xff] }
  0x2b   : > { %v2559_v27 = vld [vmem:[%s3587_s13 + $0xd9] sm:$0xff]  ;;  %v2435_v43 = vld [vmem:[%s3587_s13 + $0xf0] sm:$0xff]  ;;  %v2531_v3 = vld [vmem:[%s3587_s13 + $0x108] sm:$0xff] }
  0x2c   : > { %v2591_v35 = vld [vmem:[%s3587_s13 + $0xda] sm:$0xff]  ;;  %v2467_v58 = vld [vmem:[%s3587_s13 + $0xf1] sm:$0xff] }
  0x2d   : > { %2819 = vrot.lane.b32.xlu1 %v2818_v23, %s3491_s18  ;;  %v2436_v44 = vld [vmem:[%s3587_s13 + $0xf8] sm:$0xff]  ;;  %v250_v50 = vld [vmem:[%s3587_s13] sm:$0xff]  ;;  %v2532_v4 = vld [vmem:[%s3587_s13 + $0x110] sm:$0xff] }
  0x2e   : > { %2814 = vrot.lane.b32.xlu0 %v2788_v10, %s3491_s18  ;;  %v2432_v10 = vld [vmem:[%s3587_s13 + $0xc8] sm:$0xff]  ;;  %v3784_v55 = vpack.i.bf16 %v2436_v44, %v2435_v43  ;;  %v2468_v59 = vld [vmem:[%s3587_s13 + $0xf9] sm:$0xff] }
  0x2f   : > { %v3038_v11 = vpack.i.bf16 %v2432_v10, %v2431_v9 }
  0x31   : > { %2829 = vrot.lane.b32.xlu1 %v2828_v26, %s3492_s29 }
  0x32   : > { %2824 = vrot.lane.b32.xlu0 %v2798_v16, %s3492_s29  ;;  %v2463_v16 = vld [vmem:[%s3587_s13 + $0xc1] sm:$0xff] }
  0x33   : > { %v3048_v18 = vpack.i.bf16 %v2464_v17, %v2463_v16  ;;  %v3811_v16 = vpack.i.bf16 %v2468_v59, %v2467_v58  ;;  %v2563_v59 = vld [vmem:[%s3587_s13 + $0x109] sm:$0xff] }
  0x35   : > { %2839 = vrot.lane.b32.xlu1 %v2838_v31, %s3493_s11 }
  0x36   : > { %2834 = vrot.lane.b32.xlu0 %v2808_v20, %s3493_s11 }
  0x39   : > { %2849 = vrot.lane.b32.xlu1 %v2808_v20, %s3488_s15  ;;  %v2496_v20 = vld [vmem:[%s3587_s13 + $0xca] sm:$0xff] }
  0x3a   : > { %2844 = vrot.lane.b32.xlu0 %v2818_v23, %s3494_s12  ;;  %v3058_v21 = vpack.i.bf16 %v2496_v20, %v2495_v19 }
  0x3d   : > { %2859 = vrot.lane.b32.xlu1 %v2838_v31, %s3488_s15 }
  0x3e   : > { %2854 = vrot.lane.b32.xlu0 %v2853_v36, %s3494_s12 }
  0x41   : > { %2869 = vrot.lane.b32.xlu1 %v2853_v36, %s3487_s14 }
  0x42   : > { %2864 = vrot.lane.b32.xlu0 %v2818_v23, %s3487_s14  ;;  %v2528_v23 = vld [vmem:[%s3587_s13 + $0xe0] sm:$0xff] }
  0x45   : > { %2879 = vrot.lane.b32.xlu1 %v2878_v39, %s3489_s16 }
  0x46   : > { %2874 = vrot.lane.b32.xlu0 %v2828_v26, %s3489_s16  ;;  %v3739_v26 = vpack.i.bf16 %v2528_v23, %v2527_v22 }
  0x49   : > { %2889 = vrot.lane.b32.xlu1 %v2888_v42, %s3490_s17 }
  0x4a   : > { %2884 = vrot.lane.b32.xlu0 %v2838_v31, %s3490_s17  ;;  %v3748_v31 = vpack.i.bf16 %v2560_v28, %v2559_v27 }
  0x4d   : > { %2899 = vrot.lane.b32.xlu1 %v2898_v45, %s3491_s18 }
  0x4e   : > { %2894 = vrot.lane.b32.xlu0 %v2853_v36, %s3491_s18  ;;  %v2592_v36 = vld [vmem:[%s3587_s13 + $0xe2] sm:$0xff] }
  0x4f   : > { %v3764_v40 = vpack.i.bf16 %v2592_v36, %v2591_v35 }
  0x51   : > { %2909 = vrot.lane.b32.xlu1 %v2908_v48, %s3492_s29 }
  0x52   : > { %2904 = vrot.lane.b32.xlu0 %v2878_v39, %s3492_s29 }
  0x55   : > { %2919 = vrot.lane.b32.xlu1 %v2918_v51, %s3493_s11 }
  0x56   : > { %2914 = vrot.lane.b32.xlu0 %v2888_v42, %s3493_s11 }
  0x59   : > { %2929 = vrot.lane.b32.xlu1 %v2888_v42, %s3488_s15 }
  0x5a   : > { %2924 = vrot.lane.b32.xlu0 %v2898_v45, %s3494_s12 }
  0x5d   : > { %2939 = vrot.lane.b32.xlu1 %v2918_v51, %s3488_s15 }
  0x5e   : > { %2934 = vrot.lane.b32.xlu0 %v2933_v54, %s3494_s12 }
  0x61   : > { %2949 = vrot.lane.b32.xlu1 %v2933_v54, %s3487_s14 }
  0x62   : > { %2944 = vrot.lane.b32.xlu0 %v2898_v45, %s3487_s14 }
  0x65   : > { %2959 = vrot.lane.b32.xlu1 %v2958_v57, %s3489_s16 }
  0x66   : > { %2954 = vrot.lane.b32.xlu0 %v2908_v48, %s3489_s16 }
  0x69   : > { %2969 = vrot.lane.b32.xlu1 %v2968_v60, %s3490_s17 }
  0x6a   : > { %2964 = vrot.lane.b32.xlu0 %v2918_v51, %s3490_s17  ;;  %v251_v51 = vld [vmem:[%s3587_s13 + $0x8] sm:$0xff] }
  0x6d   : > { %2979 = vrot.lane.b32.xlu1 %v2978_v63, %s3491_s18 }
  0x6e   : > { %2974 = vrot.lane.b32.xlu0 %v2933_v54, %s3491_s18 }
  0x71   : > { %2989 = vrot.lane.b32.xlu1 %v2988_v2, %s3492_s29 }
  0x72   : > { %2984 = vrot.lane.b32.xlu0 %v2958_v57, %s3492_s29 }
  0x75   : > { %2999 = vrot.lane.b32.xlu1 %v2998_v5, %s3493_s11 }
  0x76   : > { %2994 = vrot.lane.b32.xlu0 %v2968_v60, %s3493_s11 }
  0x79   : > { %3009 = vrot.lane.b32.xlu1 %v2968_v60, %s3488_s15  ;;  %v2499_v60 = vld [vmem:[%s3587_s13 + $0xf2] sm:$0xff] }
  0x7a   : > { %3004 = vrot.lane.b32.xlu0 %v2978_v63, %s3494_s12 }
  0x7d   : > { %3019 = vrot.lane.b32.xlu1 %v2998_v5, %s3488_s15 }
  0x7e   : > { %3014 = vrot.lane.b32.xlu0 %v3013_v8, %s3494_s12 }
  0x81   : > { %3029 = vrot.lane.b32.xlu1 %v3013_v8, %s3487_s14 }
  0x82   : > { %3024 = vrot.lane.b32.xlu0 %v2978_v63, %s3487_s14 }
  0x85   : > { %3039 = vrot.lane.b32.xlu1 %v3038_v11, %s3489_s16 }
  0x86   : > { %3034 = vrot.lane.b32.xlu0 %v2988_v2, %s3489_s16  ;;  %v2500_v2 = vld [vmem:[%s3587_s13 + $0xfa] sm:$0xff] }
  0x89   : > { %3049 = vrot.lane.b32.xlu1 %v3048_v18, %s3490_s17 }
  0x8a   : > { %3044 = vrot.lane.b32.xlu0 %v2998_v5, %s3490_s17 }
  0x8d   : > { %3059 = vrot.lane.b32.xlu1 %v3058_v21, %s3491_s18 }
  0x8e   : > { %3054 = vrot.lane.b32.xlu0 %v3013_v8, %s3491_s18 }
  0x8f   : > { %v3744_v29 = vpop.permute.xlu1 %2784 }
  0x90   : > { %v2775_v30 = vpop.permute.xlu0 %2774  ;;  %v2787_v56 = vunpack.i.h.bf16 %v3744_v29  ;;  %v2786_v57 = vunpack.i.l.bf16 %v3744_v29 }
  0x91   : > { %3069 = vrot.lane.b32.xlu1 %v3739_v26, %s3492_s29  ;;  %v2777_v45 = vunpack.i.h.bf16 %v2775_v30  ;;  %v2776_v48 = vunpack.i.l.bf16 %v2775_v30 }
  0x92   : > { %3064 = vrot.lane.b32.xlu0 %v3038_v11, %s3492_s29 }
  0x93   : > { %v3751_v32 = vpop.permute.xlu1 %2789  ;;  %v1565_v61 = vsel %vm1564_vm1, %v250_v50, %v2776_v48  ;;  %v1566_v62 = vsel %vm1564_vm1, %v251_v51, %v2777_v45 }
  0x94   : > { %v2780_v33 = vpop.permute.xlu0 %2779  ;;  %v2792_v63 = vunpack.i.h.bf16 %v3751_v32  ;;  %v2791_v0 = vunpack.i.l.bf16 %v3751_v32  ;;  %v1599_v17 = vsel %vm1597_vm2, %v1566_v62, %v2787_v56 }
  0x95   : > { %3079 = vrot.lane.b32.xlu1 %v3748_v31, %s3493_s11  ;;  %v2782_v52 = vunpack.i.h.bf16 %v2780_v33  ;;  %v2781_v53 = vunpack.i.l.bf16 %v2780_v33 }
  0x96   : > { %3074 = vrot.lane.b32.xlu0 %v3048_v18, %s3493_s11 }
  0x97   : > { %v3756_v34 = vpop.permute.xlu1 %2799  ;;  %v1567_v5 = vsel %vm1564_vm1, %v3606_v14, %v2781_v53  ;;  %v1568_v6 = vsel %vm1564_vm1, %v3609_v15, %v2782_v52  ;;  %v1598_v14 = vsel %vm1597_vm2, %v1565_v61, %v2786_v57  ;;  %v3817_v15 = vpack.i.bf16 %v2500_v2, %v2499_v60  ;;  %v2564_v60 = vld [vmem:[%s3587_s13 + $0x111] sm:$0xff] }
  0x98   : > { %v3760_v39 = vpop.permute.xlu0 %2794  ;;  %v2802_v7 = vunpack.i.h.bf16 %v3756_v34  ;;  %v2801_v8 = vunpack.i.l.bf16 %v3756_v34  ;;  %v1600_v19 = vsel %vm1597_vm2, %v1567_v5, %v2791_v0  ;;  %v1601_v20 = vsel %vm1597_vm2, %v1568_v6, %v2792_v63 }
  0x99   : > { %3089 = vrot.lane.b32.xlu1 %v3048_v18, %s3488_s15  ;;  %v2797_v10 = vunpack.i.h.bf16 %v3760_v39  ;;  %v2796_v11 = vunpack.i.l.bf16 %v3760_v39  ;;  %v3819_v18 = vpack.i.bf16 %v2532_v4, %v2531_v3 }
  0x9a   : > { %3084 = vrot.lane.b32.xlu0 %v3058_v21, %s3494_s12  ;;  %v1633_v27 = vsel %vm1630_vm3, %v1600_v19, %v2801_v8  ;;  %v1634_v28 = vsel %vm1630_vm3, %v1601_v20, %v2802_v7 }
  0x9b   : > { %v3766_v41 = vpop.permute.xlu1 %2809  ;;  %v1631_v32 = vsel %vm1630_vm3, %v1598_v14, %v2796_v11  ;;  %v1632_v33 = vsel %vm1630_vm3, %v1599_v17, %v2797_v10 }
  0x9c   : > { %v3768_v42 = vpop.permute.xlu0 %2804  ;;  %v2812_v36 = vunpack.i.h.bf16 %v3766_v41  ;;  %v2811_v39 = vunpack.i.l.bf16 %v3766_v41 }
  0x9d   : > { %3099 = vrot.lane.b32.xlu1 %v3748_v31, %s3488_s15  ;;  %v2806_v22 = vunpack.i.l.bf16 %v3768_v42 }
  0x9e   : > { %3094 = vrot.lane.b32.xlu0 %v3764_v40, %s3494_s12  ;;  %v1667_v2 = vsel %vm1663_vm4, %v1634_v28, %v2812_v36 }
  0x9f   : > { %v3776_v49 = vpop.permute.xlu1 %2819  ;;  %v1664_v44 = vsel %vm1663_vm4, %v1631_v32, %v2806_v22 }
  0xa0   : > { %v3780_v54 = vpop.permute.xlu0 %2814  ;;  %v2822_v48 = vunpack.i.h.bf16 %v3776_v49  ;;  %v2821_v50 = vunpack.i.l.bf16 %v3776_v49 }
  0xa1   : > { %3109 = vrot.lane.b32.xlu1 %v3764_v40, %s3487_s14  ;;  %v2816_v29 = vunpack.i.l.bf16 %v3780_v54 }
  0xa2   : > { %3104 = vrot.lane.b32.xlu0 %v3058_v21, %s3487_s14  ;;  %v2807_v21 = vunpack.i.h.bf16 %v3768_v42  ;;  %v1700_v7 = vsel %vm1696_vm5, %v1667_v2, %v2822_v48 }
  0xa3   : > { %v3796_v1 = vpop.permute.xlu1 %2829  ;;  %v1697_v52 = vsel %vm1696_vm5, %v1664_v44, %v2816_v29  ;;  %v2596_v29 = vld [vmem:[%s3587_s13 + $0x112] sm:$0xff]  ;;  %v2503_v44 = vld [vmem:[%s3587_s13 + $0x122] sm:$0xff] }
  0xa4   : > { %v2825_v9 = vpop.permute.xlu0 %2824  ;;  %v1665_v45 = vsel %vm1663_vm4, %v1632_v33, %v2807_v21  ;;  %v2832_v53 = vunpack.i.h.bf16 %v3796_v1 }
  0xa5   : > { %3119 = vrot.lane.b32.xlu1 %v3784_v55, %s3489_s16  ;;  %v2827_v34 = vunpack.i.h.bf16 %v2825_v9  ;;  %v2826_v35 = vunpack.i.l.bf16 %v2825_v9  ;;  %v3865_v9 = vpack.i.bf16 %v2564_v60, %v2563_v59 }
  0xa6   : > { %3114 = vrot.lane.b32.xlu0 %v3739_v26, %s3489_s16  ;;  %v2817_v26 = vunpack.i.h.bf16 %v3780_v54  ;;  %v1733_v11 = vsel %vm1729_vm6, %v1700_v7, %v2832_v53  ;;  %v2536_v53 = vld [vmem:[%s3587_s13 + $0x140] sm:$0xff] }
  0xa7   : > { %v2840_v23 = vpop.permute.xlu1 %2839  ;;  %v1730_v58 = vsel %vm1729_vm6, %v1697_v52, %v2826_v35  ;;  %v2439_v35 = vld [vmem:[%s3587_s13 + $0x120] sm:$0xff]  ;;  %v2504_v52 = vld [vmem:[%s3587_s13 + $0x12a] sm:$0xff] }
  0xa8   : > { %v2835_v30 = vpop.permute.xlu0 %2834  ;;  %v1698_v41 = vsel %vm1696_vm5, %v1665_v45, %v2817_v26  ;;  %v2842_v61 = vunpack.i.h.bf16 %v2840_v23  ;;  %v2841_v62 = vunpack.i.l.bf16 %v2840_v23  ;;  %v2595_v26 = vld [vmem:[%s3587_s13 + $0x10a] sm:$0xff] }
  0xa9   : > { %3129 = vrot.lane.b32.xlu1 %v3811_v16, %s3490_s17  ;;  %v2837_v42 = vunpack.i.h.bf16 %v2835_v30  ;;  %v2836_v43 = vunpack.i.l.bf16 %v2835_v30  ;;  %v1731_v49 = vsel %vm1729_vm6, %v1698_v41, %v2827_v34  ;;  %v3889_v32 = vpack.i.bf16 %v2596_v29, %v2595_v26  ;;  %v2535_v41 = vld [vmem:[%s3587_s13 + $0x138] sm:$0xff] }
  0xaa   : > { %3124 = vrot.lane.b32.xlu0 %v3748_v31, %s3490_s17  ;;  %v2831_v31 = vunpack.i.l.bf16 %v3796_v1  ;;  %v1666_v1 = vsel %vm1663_vm4, %v1633_v27, %v2811_v39  ;;  %v1766_v20 = vsel %vm1762_vm7, %v1733_v11, %v2842_v61 }
  0xab   : > { %v3841_v51 = vpop.permute.xlu1 %2849  ;;  %v1763_v63 = vsel %vm1762_vm7, %v1730_v58, %v2836_v43  ;;  %v1764_v0 = vsel %vm1762_vm7, %v1731_v49, %v2837_v42  ;;  %v1699_v6 = vsel %vm1696_vm5, %v1666_v1, %v2821_v50  ;;  %v2471_v42 = vld [vmem:[%s3587_s13 + $0x121] sm:$0xff]  ;;  %v2472_v43 = vld [vmem:[%s3587_s13 + $0x129] sm:$0xff]  ;;  %v3927_v1 = vpack.i.bf16 %v2536_v53, %v2535_v41 }
  0xac   : > { %v2845_v54 = vpop.permute.xlu0 %2844  ;;  %v1732_v10 = vsel %vm1729_vm6, %v1699_v6, %v2831_v31  ;;  %v2852_v31 = vunpack.i.h.bf16 %v3841_v51  ;;  %v3923_v60 = vpack.i.bf16 %v2472_v43, %v2471_v42 }
  0xad   : > { %v2847_v56 = vunpack.i.h.bf16 %v2845_v54  ;;  %v2846_v57 = vunpack.i.l.bf16 %v2845_v54  ;;  %3139 = vrot.lane.b32.xlu1 %v3817_v15, %s3491_s18  ;;  %v1765_v19 = vsel %vm1762_vm7, %v1732_v10, %v2841_v62  ;;  %v2851_v54 = vunpack.i.l.bf16 %v3841_v51 }
  0xae   : > { %3134 = vrot.lane.b32.xlu0 %v3764_v40, %s3491_s18 }
  0xaf   : > { %v3859_v3 = vpop.permute.xlu1 %2859  ;;  %v1796_v4 = vsel %vm1795_vm8, %v1763_v63, %v2846_v57  ;;  %v1797_v5 = vsel %vm1795_vm8, %v1764_v0, %v2847_v56  ;;  %v3925_v0 = vpack.i.bf16 %v2504_v52, %v2503_v44 }
  0xb0   : > { %v2855_v8 = vpop.permute.xlu0 %2854  ;;  %v1828_v40 = vpack.c.bf16 %v1797_v5, %v1796_v4  ;;  %v2862_v45 = vunpack.i.h.bf16 %v3859_v3  ;;  %v2861_v48 = vunpack.i.l.bf16 %v3859_v3  ;;  %v1569_v4 = vsel %vm1564_vm1, %v3600_v12, %v2851_v54 }
  0xb1   : > { %v2857_v14 = vunpack.i.h.bf16 %v2855_v8  ;;  %v2856_v17 = vunpack.i.l.bf16 %v2855_v8  ;;  %3149 = vrot.lane.b32.xlu1 %v3819_v18, %s3492_s29  ;;  %v1570_v5 = vsel %vm1564_vm1, %v3603_v13, %v2852_v31 }
  0xb2   : > { %3144 = vrot.lane.b32.xlu0 %v3784_v55, %s3492_s29  ;;  %2665 = vmatprep.mubr.msk.bf16.mxu0 %vm1864_vm9, %v1828_v40  ;;  %v1571_v51 = vsel %vm1564_vm1, %v3626_v24, %v2861_v48  ;;  %v1572_v2 = vsel %vm1564_vm1, %v3629_v25, %v2862_v45  ;;  %v2568_v48 = vld [vmem:[%s3587_s13 + $0x141] sm:$0xff] }
  0xb3   : > { %v1798_v21 = vsel %vm1795_vm8, %v1765_v19, %v2856_v17  ;;  %v1799_v22 = vsel %vm1795_vm8, %v1766_v20, %v2857_v14  ;;  %v2870_v23 = vpop.permute.xlu1 %2869 }
  0xb4   : > { %v2865_v27 = vpop.permute.xlu0 %2864  ;;  %v1829_v28 = vpack.c.bf16 %v1799_v22, %v1798_v21  ;;  %v2872_v56 = vunpack.i.h.bf16 %v2870_v23  ;;  %v2871_v57 = vunpack.i.l.bf16 %v2870_v23 }
  0xb5   : > { %3159 = vrot.lane.b32.xlu1 %v3865_v9, %s3493_s11  ;;  %v2867_v58 = vunpack.i.h.bf16 %v2865_v27  ;;  %v2866_v49 = vunpack.i.l.bf16 %v2865_v27 }
  0xb6   : > { %3154 = vrot.lane.b32.xlu0 %v3811_v16, %s3493_s11  ;;  %2666 = vmatmul.mubr.msk.bf16.vlgmr.msra.gmra.mrb[0].mxu0 %vm1864_vm9, %v1829_v28  ;;  %v1604_v6 = vsel %vm1597_vm2, %v1571_v51, %v2871_v57  ;;  %v1605_v7 = vsel %vm1597_vm2, %v1572_v2, %v2872_v56 }
  0xb7   : > { %v2880_v55 = vpop.permute.xlu1 %2879  ;;  %v1602_v24 = vsel %vm1597_vm2, %v1569_v4, %v2866_v49  ;;  %v1603_v25 = vsel %vm1597_vm2, %v1570_v5, %v2867_v58 }
  0xb8   : > { %v2875_v30 = vpop.permute.xlu0 %2874  ;;  %v2882_v61 = vunpack.i.h.bf16 %v2880_v55  ;;  %v2881_v62 = vunpack.i.l.bf16 %v2880_v55 }
  0xb9   : > { %3169 = vrot.lane.b32.xlu1 %v3811_v16, %s3488_s15  ;;  %v2440_v16 = vld [vmem:[%s3587_s13 + $0x128] sm:$0xff]  ;;  %v2876_v3 = vunpack.i.l.bf16 %v2875_v30 }
  0xba   : > { %3164 = vrot.lane.b32.xlu0 %v3817_v15, %s3494_s12  ;;  %v3912_v50 = vpack.i.bf16 %v2440_v16, %v2439_v35  ;;  %v1637_v12 = vsel %vm1630_vm3, %v1604_v6, %v2881_v62  ;;  %v1638_v13 = vsel %vm1630_vm3, %v1605_v7, %v2882_v61 }
  0xbb   : > { %v3891_v33 = vpop.permute.xlu1 %2889 }
  0xbc   : > { %v3893_v34 = vpop.permute.xlu0 %2884  ;;  %v2892_v22 = vunpack.i.h.bf16 %v3891_v33  ;;  %v2891_v23 = vunpack.i.l.bf16 %v3891_v33 }
  0xbd   : > { %3179 = vrot.lane.b32.xlu1 %v3865_v9, %s3488_s15  ;;  %v2887_v8 = vunpack.i.h.bf16 %v3893_v34  ;;  %v2886_v40 = vunpack.i.l.bf16 %v3893_v34 }
  0xbe   : > { %3174 = vrot.lane.b32.xlu0 %v3889_v32, %s3494_s12  ;;  %v1670_v54 = vsel %vm1663_vm4, %v1637_v12, %v2891_v23  ;;  %v1671_v56 = vsel %vm1663_vm4, %v1638_v13, %v2892_v22  ;;  %v2507_v22 = vld [vmem:[%s3587_s13 + $0x152] sm:$0xff] }
  0xbf   : > { %v3901_v36 = vpop.permute.xlu1 %2899 }
  0xc0   : > { %v3903_v39 = vpop.permute.xlu0 %2894  ;;  %v2902_v29 = vunpack.i.h.bf16 %v3901_v36 }
  0xc1   : > { %3189 = vrot.lane.b32.xlu1 %v3889_v32, %s3487_s14  ;;  %v2897_v11 = vunpack.i.h.bf16 %v3903_v39  ;;  %v2896_v14 = vunpack.i.l.bf16 %v3903_v39 }
  0xc2   : > { %3184 = vrot.lane.b32.xlu0 %v3817_v15, %s3487_s14  ;;  %v2877_v15 = vunpack.i.h.bf16 %v2875_v30  ;;  %v2901_v30 = vunpack.i.l.bf16 %v3901_v36  ;;  %v2567_v36 = vld [vmem:[%s3587_s13 + $0x139] sm:$0xff]  ;;  %v1704_v61 = vsel %vm1696_vm5, %v1671_v56, %v2902_v29  ;;  %v4044_v29 = vld [vmem:[%s3587_s13 + $0x170] sm:$0xff] }
  0xc3   : > { %v3921_v59 = vpop.permute.xlu1 %2909  ;;  %v3987_v51 = vpack.i.bf16 %v2568_v48, %v2567_v36 }
  0xc4   : > { %v2905_v63 = vpop.permute.xlu0 %2904  ;;  %v1636_v19 = vsel %vm1630_vm3, %v1603_v25, %v2877_v15  ;;  %v2912_v16 = vunpack.i.h.bf16 %v3921_v59 }
  0xc5   : > { %3199 = vrot.lane.b32.xlu1 %v3912_v50, %s3489_s16  ;;  %v2907_v20 = vunpack.i.h.bf16 %v2905_v63  ;;  %v2906_v21 = vunpack.i.l.bf16 %v2905_v63  ;;  %v1669_v26 = vsel %vm1663_vm4, %v1636_v19, %v2887_v8 }
  0xc6   : > { %3194 = vrot.lane.b32.xlu0 %v3819_v18, %s3489_s16  ;;  %v1635_v18 = vsel %vm1630_vm3, %v1602_v24, %v2876_v3  ;;  %v1702_v33 = vsel %vm1696_vm5, %v1669_v26, %v2897_v11  ;;  %v1737_v2 = vsel %vm1729_vm6, %v1704_v61, %v2912_v16  ;;  %v4041_v26 = vld [vmem:[%s3587_s13 + $0x168] sm:$0xff] }
  0xc7   : > { %v2920_v10 = vpop.permute.xlu1 %2919  ;;  %v1668_v55 = vsel %vm1663_vm4, %v1635_v18, %v2886_v40  ;;  %v1735_v43 = vsel %vm1729_vm6, %v1702_v33, %v2907_v20  ;;  %v2599_v40 = vld [vmem:[%s3587_s13 + $0x13a] sm:$0xff]  ;;  %v2475_v20 = vld [vmem:[%s3587_s13 + $0x151] sm:$0xff] }
  0xc8   : > { %v2915_v17 = vpop.permute.xlu0 %2914  ;;  %v1701_v35 = vsel %vm1696_vm5, %v1668_v55, %v2896_v14  ;;  %v2922_v52 = vunpack.i.h.bf16 %v2920_v10  ;;  %v2921_v41 = vunpack.i.l.bf16 %v2920_v10  ;;  %v2600_v10 = vld [vmem:[%s3587_s13 + $0x142] sm:$0xff]  ;;  %v2508_v55 = vld [vmem:[%s3587_s13 + $0x15a] sm:$0xff] }
  0xc9   : > { %3209 = vrot.lane.b32.xlu1 %v3923_v60, %s3490_s17  ;;  %v2917_v27 = vunpack.i.h.bf16 %v2915_v17  ;;  %v2916_v28 = vunpack.i.l.bf16 %v2915_v17  ;;  %v1734_v42 = vsel %vm1729_vm6, %v1701_v35, %v2906_v21  ;;  %v4011_v13 = vpack.i.bf16 %v2600_v10, %v2599_v40  ;;  %v4022_v17 = vld [vmem:[%s3587_s13 + $0x150] sm:$0xff]  ;;  %v2476_v21 = vld [vmem:[%s3587_s13 + $0x159] sm:$0xff] }
  0xca   : > { %3204 = vrot.lane.b32.xlu0 %v3865_v9, %s3490_s17  ;;  %v2911_v9 = vunpack.i.l.bf16 %v3921_v59  ;;  %v1703_v59 = vsel %vm1696_vm5, %v1670_v54, %v2901_v30  ;;  %v1770_v5 = vsel %vm1762_vm7, %v1737_v2, %v2922_v52  ;;  %v4054_v48 = vpack.i.bf16 %v2508_v55, %v2507_v22 }
  0xcb   : > { %v3963_v34 = vpop.permute.xlu1 %2929  ;;  %v1767_v53 = vsel %vm1762_vm7, %v1734_v42, %v2916_v28  ;;  %v1768_v31 = vsel %vm1762_vm7, %v1735_v43, %v2917_v27  ;;  %v4052_v43 = vpack.i.bf16 %v2476_v21, %v2475_v20  ;;  %v4058_v52 = vpack.i.bf16 %v4044_v29, %v4041_v26  ;;  %v2572_v21 = vld [vmem:[%s3587_s13 + $0x171] sm:$0xff] }
  0xcc   : > { %v2925_v39 = vpop.permute.xlu0 %2924  ;;  %v2932_v30 = vunpack.i.h.bf16 %v3963_v34  ;;  %v2931_v35 = vunpack.i.l.bf16 %v3963_v34 }
  0xcd   : > { %v2927_v44 = vunpack.i.h.bf16 %v2925_v39  ;;  %v2926_v45 = vunpack.i.l.bf16 %v2925_v39  ;;  %3219 = vrot.lane.b32.xlu1 %v3925_v0, %s3491_s18 }
  0xce   : > { %3214 = vrot.lane.b32.xlu0 %v3889_v32, %s3491_s18  ;;  %v1736_v32 = vsel %vm1729_vm6, %v1703_v59, %v2911_v9  ;;  %v1574_v54 = vsel %vm1564_vm1, %v3660_v38, %v2932_v30 }
  0xcf   : > { %v1800_v57 = vsel %vm1795_vm8, %v1767_v53, %v2926_v45  ;;  %v1801_v58 = vsel %vm1795_vm8, %v1768_v31, %v2927_v44  ;;  %v3983_v49 = vpop.permute.xlu1 %2939  ;;  %v1769_v4 = vsel %vm1762_vm7, %v1736_v32, %v2921_v41  ;;  %v1573_v31 = vsel %vm1564_vm1, %v3657_v37, %v2931_v35 }
  0xd0   : > { %v1830_v62 = vpack.c.bf16 %v1801_v58, %v1800_v57  ;;  %v2935_v63 = vpop.permute.xlu0 %2934  ;;  %v2942_v23 = vunpack.i.h.bf16 %v3983_v49  ;;  %v2941_v27 = vunpack.i.l.bf16 %v3983_v49 }
  0xd1   : > { %v2937_v15 = vunpack.i.h.bf16 %v2935_v63  ;;  %v2936_v3 = vunpack.i.l.bf16 %v2935_v63  ;;  %3229 = vrot.lane.b32.xlu1 %v3927_v1, %s3492_s29 }
  0xd2   : > { %3224 = vrot.lane.b32.xlu0 %v3912_v50, %s3492_s29  ;;  %2669 = vmatprep.mubr.msk.bf16.mxu0 %vm1864_vm9, %v1830_v62  ;;  %v1575_v34 = vsel %vm1564_vm1, %v3675_v46, %v2941_v27 }
  0xd3   : > { %v1802_v6 = vsel %vm1795_vm8, %v1769_v4, %v2936_v3  ;;  %v1803_v7 = vsel %vm1795_vm8, %v1770_v5, %v2937_v15  ;;  %v2950_v24 = vpop.permute.xlu1 %2949 }
  0xd4   : > { %v1831_v25 = vpack.c.bf16 %v1803_v7, %v1802_v6  ;;  %v2945_v8 = vpop.permute.xlu0 %2944  ;;  %v2952_v33 = vunpack.i.h.bf16 %v2950_v24  ;;  %v2951_v16 = vunpack.i.l.bf16 %v2950_v24 }
  0xd5   : > { %3239 = vrot.lane.b32.xlu1 %v3987_v51, %s3493_s11  ;;  %v2947_v9 = vunpack.i.h.bf16 %v2945_v8  ;;  %v2946_v39 = vunpack.i.l.bf16 %v2945_v8 }
  0xd6   : > { %3234 = vrot.lane.b32.xlu0 %v3923_v60, %s3493_s11  ;;  %2670 = vmatmul.mubr.msk.bf16.gmra.mrb[4].mxu0 %vm1864_vm9, %v1831_v25  ;;  %v1608_v56 = vsel %vm1597_vm2, %v1575_v34, %v2951_v16 }
  0xd7   : > { %v2960_v50 = vpop.permute.xlu1 %2959  ;;  %v1606_v46 = vsel %vm1597_vm2, %v1573_v31, %v2946_v39 }
  0xd8   : > { %v2955_v12 = vpop.permute.xlu0 %2954  ;;  %v2962_v44 = vunpack.i.h.bf16 %v2960_v50  ;;  %v2961_v45 = vunpack.i.l.bf16 %v2960_v50 }
  0xd9   : > { %3249 = vrot.lane.b32.xlu1 %v3923_v60, %s3488_s15  ;;  %v2444_v60 = vld [vmem:[%s3587_s13 + $0x158] sm:$0xff]  ;;  %v2957_v41 = vunpack.i.h.bf16 %v2955_v12  ;;  %v2956_v53 = vunpack.i.l.bf16 %v2955_v12 }
  0xda   : > { %3244 = vrot.lane.b32.xlu0 %v3925_v0, %s3494_s12  ;;  %v4037_v28 = vpack.i.bf16 %v2444_v60, %v4022_v17  ;;  %v1641_v37 = vsel %vm1630_vm3, %v1608_v56, %v2961_v45 }
  0xdb   : > { %v4013_v11 = vpop.permute.xlu1 %2969 }
  0xdc   : > { %v4015_v14 = vpop.permute.xlu0 %2964  ;;  %v2972_v3 = vunpack.i.h.bf16 %v4013_v11  ;;  %v2971_v4 = vunpack.i.l.bf16 %v4013_v11 }
  0xdd   : > { %3259 = vrot.lane.b32.xlu1 %v3987_v51, %s3488_s15  ;;  %v2967_v58 = vunpack.i.h.bf16 %v4015_v14  ;;  %v2966_v49 = vunpack.i.l.bf16 %v4015_v14 }
  0xde   : > { %3254 = vrot.lane.b32.xlu0 %v4011_v13, %s3494_s12  ;;  %v1674_v30 = vsel %vm1663_vm4, %v1641_v37, %v2971_v4 }
  0xdf   : > { %v4025_v18 = vpop.permute.xlu1 %2979 }
  0xe0   : > { %v4027_v19 = vpop.permute.xlu0 %2974  ;;  %v2982_v25 = vunpack.i.h.bf16 %v4025_v18  ;;  %v2981_v8 = vunpack.i.l.bf16 %v4025_v18  ;;  %v2571_v18 = vld [vmem:[%s3587_s13 + $0x169] sm:$0xff] }
  0xe1   : > { %3269 = vrot.lane.b32.xlu1 %v4011_v13, %s3487_s14  ;;  %v2977_v61 = vunpack.i.h.bf16 %v4027_v19  ;;  %v2976_v62 = vunpack.i.l.bf16 %v4027_v19 }
  0xe2   : > { %3264 = vrot.lane.b32.xlu0 %v3925_v0, %s3487_s14  ;;  %v1576_v0 = vsel %vm1564_vm1, %v3678_v47, %v2942_v23  ;;  %v1607_v47 = vsel %vm1597_vm2, %v1574_v54, %v2947_v9  ;;  %v1707_v39 = vsel %vm1696_vm5, %v1674_v30, %v2981_v8 }
  0xe3   : > { %v4050_v42 = vpop.permute.xlu1 %2989  ;;  %v1609_v57 = vsel %vm1597_vm2, %v1576_v0, %v2952_v33  ;;  %v1640_v32 = vsel %vm1630_vm3, %v1607_v47, %v2957_v41 }
  0xe4   : > { %v2985_v36 = vpop.permute.xlu0 %2984  ;;  %v1642_v38 = vsel %vm1630_vm3, %v1609_v57, %v2962_v44  ;;  %v1673_v24 = vsel %vm1663_vm4, %v1640_v32, %v2967_v58  ;;  %v2992_v12 = vunpack.i.h.bf16 %v4050_v42  ;;  %v2603_v58 = vld [vmem:[%s3587_s13 + $0x16a] sm:$0xff]  ;;  %v2479_v32 = vld [vmem:[%s3587_s13 + $0x181] sm:$0xff] }
  0xe5   : > { %3279 = vrot.lane.b32.xlu1 %v4037_v28, %s3489_s16  ;;  %v2987_v2 = vunpack.i.h.bf16 %v2985_v36  ;;  %v2986_v15 = vunpack.i.l.bf16 %v2985_v36  ;;  %v1706_v10 = vsel %vm1696_vm5, %v1673_v24, %v2977_v61  ;;  %v1675_v35 = vsel %vm1663_vm4, %v1642_v38, %v2972_v3  ;;  %v4174_v24 = vld [vmem:[%s3587_s13 + $0x1a0] sm:$0xff] }
  0xe6   : > { %3274 = vrot.lane.b32.xlu0 %v3927_v1, %s3489_s16  ;;  %v1639_v1 = vsel %vm1630_vm3, %v1606_v46, %v2956_v53  ;;  %v4118_v36 = vpack.i.bf16 %v2572_v21, %v2571_v18 }
  0xe7   : > { %v3000_v59 = vpop.permute.xlu1 %2999  ;;  %v1672_v7 = vsel %vm1663_vm4, %v1639_v1, %v2966_v49  ;;  %v1739_v60 = vsel %vm1729_vm6, %v1706_v10, %v2987_v2  ;;  %v2604_v49 = vld [vmem:[%s3587_s13 + $0x172] sm:$0xff]  ;;  %v2480_v2 = vld [vmem:[%s3587_s13 + $0x189] sm:$0xff] }
  0xe8   : > { %v2995_v63 = vpop.permute.xlu0 %2994  ;;  %v1705_v40 = vsel %vm1696_vm5, %v1672_v7, %v2976_v62  ;;  %v3002_v22 = vunpack.i.h.bf16 %v3000_v59  ;;  %v3001_v23 = vunpack.i.l.bf16 %v3000_v59  ;;  %v4144_v37 = vpack.i.bf16 %v2604_v49, %v2603_v58  ;;  %v2447_v62 = vld [vmem:[%s3587_s13 + $0x180] sm:$0xff]  ;;  %v4171_v7 = vld [vmem:[%s3587_s13 + $0x198] sm:$0xff]  ;;  %v265_v10 = vld [vmem:[%s3587_s13 + $0xb0] sm:$0xff] }
  0xe9   : > { %3289 = vrot.lane.b32.xlu1 %v4052_v43, %s3490_s17  ;;  %v2997_v5 = vunpack.i.h.bf16 %v2995_v63  ;;  %v2996_v6 = vunpack.i.l.bf16 %v2995_v63  ;;  %v1738_v14 = vsel %vm1729_vm6, %v1705_v40, %v2986_v15  ;;  %v2511_v15 = vld [vmem:[%s3587_s13 + $0x182] sm:$0xff]  ;;  %v4186_v18 = vpack.i.bf16 %v2480_v2, %v2479_v32 }
  0xea   : > { %3284 = vrot.lane.b32.xlu0 %v3987_v51, %s3490_s17  ;;  %v2991_v51 = vunpack.i.l.bf16 %v4050_v42  ;;  %v1708_v42 = vsel %vm1696_vm5, %v1675_v35, %v2982_v25  ;;  %v264_v40 = vld [vmem:[%s3587_s13 + $0xa8] sm:$0xff] }
  0xeb   : > { %v4094_v50 = vpop.permute.xlu1 %3009  ;;  %v1771_v27 = vsel %vm1762_vm7, %v1738_v14, %v2996_v6  ;;  %v1772_v55 = vsel %vm1762_vm7, %v1739_v60, %v2997_v5  ;;  %v1741_v34 = vsel %vm1729_vm6, %v1708_v42, %v2992_v12  ;;  %v2512_v6 = vld [vmem:[%s3587_s13 + $0x18a] sm:$0xff]  ;;  %v263_v14 = vld [vmem:[%s3587_s13 + $0x98] sm:$0xff] }
  0xec   : > { %v3005_v11 = vpop.permute.xlu0 %3004  ;;  %v1774_v31 = vsel %vm1762_vm7, %v1741_v34, %v3002_v22  ;;  %v3012_v25 = vunpack.i.h.bf16 %v4094_v50  ;;  %v3011_v8 = vunpack.i.l.bf16 %v4094_v50  ;;  %v3388_v50 = vpack.i.bf16 %v4174_v24, %v4171_v7 }
  0xed   : > { %v3007_v19 = vunpack.i.h.bf16 %v3005_v11  ;;  %v3006_v20 = vunpack.i.l.bf16 %v3005_v11  ;;  %3299 = vrot.lane.b32.xlu1 %v4054_v48, %s3491_s18  ;;  %v262_v11 = vld [vmem:[%s3587_s13 + $0x90] sm:$0xff] }
  0xee   : > { %3294 = vrot.lane.b32.xlu0 %v4011_v13, %s3491_s18  ;;  %v1740_v13 = vsel %vm1729_vm6, %v1707_v39, %v2991_v51 }
  0xef   : > { %v1804_v33 = vsel %vm1795_vm8, %v1771_v27, %v3006_v20  ;;  %v1805_v16 = vsel %vm1795_vm8, %v1772_v55, %v3007_v19  ;;  %v4114_v9 = vpop.permute.xlu1 %3019  ;;  %v1773_v53 = vsel %vm1762_vm7, %v1740_v13, %v3001_v23  ;;  %v4188_v27 = vpack.i.bf16 %v2512_v6, %v2511_v15 }
  0xf0   : > { %v1832_v44 = vpack.c.bf16 %v1805_v16, %v1804_v33  ;;  %v3015_v45 = vpop.permute.xlu0 %3014  ;;  %v3022_v3 = vunpack.i.h.bf16 %v4114_v9  ;;  %v3021_v4 = vunpack.i.l.bf16 %v4114_v9  ;;  %v1577_v33 = vsel %vm1564_vm1, %v262_v11, %v3011_v8  ;;  %v2576_v8 = vld [vmem:[%s3587_s13 + $0x1a1] sm:$0xff] }
  0xf1   : > { %v3017_v0 = vunpack.i.h.bf16 %v3015_v45  ;;  %v3016_v41 = vunpack.i.l.bf16 %v3015_v45  ;;  %3309 = vrot.lane.b32.xlu1 %v4058_v52, %s3492_s29  ;;  %v1578_v16 = vsel %vm1564_vm1, %v263_v14, %v3012_v25 }
  0xf2   : > { %3304 = vrot.lane.b32.xlu0 %v4037_v28, %s3492_s29  ;;  %2673 = vmatprep.mubr.msk.bf16.mxu0 %vm1864_vm9, %v1832_v44  ;;  %v1579_v55 = vsel %vm1564_vm1, %v264_v40, %v3021_v4 }
  0xf3   : > { %v1806_v54 = vsel %vm1795_vm8, %v1773_v53, %v3016_v41  ;;  %v1807_v56 = vsel %vm1795_vm8, %v1774_v31, %v3017_v0  ;;  %v3030_v57 = vpop.permute.xlu1 %3029 }
  0xf4   : > { %v1833_v46 = vpack.c.bf16 %v1807_v56, %v1806_v54  ;;  %v3025_v47 = vpop.permute.xlu0 %3024  ;;  %v3032_v12 = vunpack.i.h.bf16 %v3030_v57  ;;  %v3031_v51 = vunpack.i.l.bf16 %v3030_v57 }
  0xf5   : > { %3319 = vrot.lane.b32.xlu1 %v4118_v36, %s3493_s11  ;;  %v3027_v60 = vunpack.i.h.bf16 %v3025_v47  ;;  %v3026_v19 = vunpack.i.l.bf16 %v3025_v47 }
  0xf6   : > { %3314 = vrot.lane.b32.xlu0 %v4052_v43, %s3493_s11  ;;  %2674 = vmatmul.mubr.msk.bf16.gmra.mrb[8].mxu0 %vm1864_vm9, %v1833_v46  ;;  %v1612_v9 = vsel %vm1597_vm2, %v1579_v55, %v3031_v51 }
  0xf7   : > { %v3040_v28 = vpop.permute.xlu1 %3039  ;;  %v1610_v42 = vsel %vm1597_vm2, %v1577_v33, %v3026_v19  ;;  %v1611_v44 = vsel %vm1597_vm2, %v1578_v16, %v3027_v60 }
  0xf8   : > { %v4138_v59 = vpop.permute.xlu0 %3034  ;;  %v3042_v21 = vunpack.i.h.bf16 %v3040_v28  ;;  %v3041_v22 = vunpack.i.l.bf16 %v3040_v28 }
  0xf9   : > { %3329 = vrot.lane.b32.xlu1 %v4052_v43, %s3488_s15  ;;  %v2448_v43 = vld [vmem:[%s3587_s13 + $0x188] sm:$0xff]  ;;  %v3037_v30 = vunpack.i.h.bf16 %v4138_v59  ;;  %v3036_v35 = vunpack.i.l.bf16 %v4138_v59 }
  0xfa   : > { %3324 = vrot.lane.b32.xlu0 %v4054_v48, %s3494_s12  ;;  %v4167_v5 = vpack.i.bf16 %v2448_v43, %v2447_v62  ;;  %v1645_v0 = vsel %vm1630_vm3, %v1612_v9, %v3041_v22 }
  0xfb   : > { %v4146_v38 = vpop.permute.xlu1 %3049  ;;  %v1644_v56 = vsel %vm1630_vm3, %v1611_v44, %v3037_v30 }
  0xfc   : > { %v4148_v61 = vpop.permute.xlu0 %3044  ;;  %v3052_v47 = vunpack.i.h.bf16 %v4146_v38  ;;  %v3051_v28 = vunpack.i.l.bf16 %v4146_v38 }
  0xfd   : > { %3339 = vrot.lane.b32.xlu1 %v4118_v36, %s3488_s15  ;;  %v3047_v45 = vunpack.i.h.bf16 %v4148_v61  ;;  %v3046_v13 = vunpack.i.l.bf16 %v4148_v61 }
  0xfe   : > { %3334 = vrot.lane.b32.xlu0 %v4144_v37, %s3494_s12  ;;  %v1678_v11 = vsel %vm1663_vm4, %v1645_v0, %v3051_v28 }
  0xff   : > { %v4156_v63 = vpop.permute.xlu1 %3059  ;;  %v1677_v61 = vsel %vm1663_vm4, %v1644_v56, %v3047_v45 }
 0x100   : > { %v4158_v1 = vpop.permute.xlu0 %3054  ;;  %v3062_v62 = vunpack.i.h.bf16 %v4156_v63  ;;  %v3061_v43 = vunpack.i.l.bf16 %v4156_v63  ;;  %v2575_v63 = vld [vmem:[%s3587_s13 + $0x199] sm:$0xff] }
 0x101   : > { %3349 = vrot.lane.b32.xlu1 %v4144_v37, %s3487_s14  ;;  %v3057_v53 = vunpack.i.h.bf16 %v4158_v1  ;;  %v3056_v31 = vunpack.i.l.bf16 %v4158_v1 }
 0x102   : > { %3344 = vrot.lane.b32.xlu0 %v4054_v48, %s3487_s14  ;;  %v1580_v48 = vsel %vm1564_vm1, %v265_v10, %v3022_v3 }
 0x103   : > { %v4184_v20 = vpop.permute.xlu1 %3069  ;;  %v1613_v39 = vsel %vm1597_vm2, %v1580_v48, %v3032_v12  ;;  %v1710_v38 = vsel %vm1696_vm5, %v1677_v61, %v3057_v53  ;;  %v3398_v48 = vpack.i.bf16 %v2576_v8, %v2575_v63 }
 0x104   : > { %v3065_v23 = vpop.permute.xlu0 %3064  ;;  %v1646_v41 = vsel %vm1630_vm3, %v1613_v39, %v3042_v21  ;;  %v3072_v2 = vunpack.i.h.bf16 %v4184_v20  ;;  %v1711_v21 = vsel %vm1696_vm5, %v1678_v11, %v3061_v43  ;;  %v2607_v39 = vld [vmem:[%s3587_s13 + $0x19a] sm:$0xff] }
 0x105   : > { %3359 = vrot.lane.b32.xlu1 %v4167_v5, %s3489_s16  ;;  %v3067_v57 = vunpack.i.h.bf16 %v3065_v23  ;;  %v3066_v46 = vunpack.i.l.bf16 %v3065_v23  ;;  %v1679_v14 = vsel %vm1663_vm4, %v1646_v41, %v3052_v47 }
 0x106   : > { %3354 = vrot.lane.b32.xlu0 %v4058_v52, %s3489_s16  ;;  %v1643_v52 = vsel %vm1630_vm3, %v1610_v42, %v3036_v35  ;;  %v1712_v22 = vsel %vm1696_vm5, %v1679_v14, %v3062_v62  ;;  %v2608_v42 = vld [vmem:[%s3587_s13 + $0x1a2] sm:$0xff] }
 0x107   : > { %v3080_v34 = vpop.permute.xlu1 %3079  ;;  %v1676_v59 = vsel %vm1663_vm4, %v1643_v52, %v3046_v13  ;;  %v1743_v4 = vsel %vm1729_vm6, %v1710_v38, %v3067_v57  ;;  %v1745_v30 = vsel %vm1729_vm6, %v1712_v22, %v3072_v2  ;;  %v3408_v7 = vpack.i.bf16 %v2608_v42, %v2607_v39  ;;  %v268_v57 = vld [vmem:[%s3587_s13 + $0xd8] sm:$0xff] }
 0x108   : > { %v3075_v54 = vpop.permute.xlu0 %3074  ;;  %v1709_v32 = vsel %vm1696_vm5, %v1676_v59, %v3056_v31  ;;  %v3082_v40 = vunpack.i.h.bf16 %v3080_v34  ;;  %v3081_v10 = vunpack.i.l.bf16 %v3080_v34 }
 0x109   : > { %3369 = vrot.lane.b32.xlu1 %v4186_v18, %s3490_s17  ;;  %v3077_v58 = vunpack.i.h.bf16 %v3075_v54  ;;  %v3076_v49 = vunpack.i.l.bf16 %v3075_v54  ;;  %v1742_v3 = vsel %vm1729_vm6, %v1709_v32, %v3066_v46  ;;  %v269_v46 = vld [vmem:[%s3587_s13 + $0xe0] sm:$0xff] }
 0x10a   : > { %3364 = vrot.lane.b32.xlu0 %v4118_v36, %s3490_s17  ;;  %v3071_v36 = vunpack.i.l.bf16 %v4184_v20  ;;  %v1778_v9 = vsel %vm1762_vm7, %v1745_v30, %v3082_v40 }
 0x10b   : > { %v4224_v1 = vpop.permute.xlu1 %3089  ;;  %v1775_v12 = vsel %vm1762_vm7, %v1742_v3, %v3076_v49  ;;  %v1776_v51 = vsel %vm1762_vm7, %v1743_v4, %v3077_v58  ;;  %v266_v58 = vld [vmem:[%s3587_s13 + $0xc0] sm:$0xff]  ;;  %v267_v49 = vld [vmem:[%s3587_s13 + $0xc8] sm:$0xff] }
 0x10c   : > { %v3085_v15 = vpop.permute.xlu0 %3084  ;;  %v3091_v56 = vunpack.i.l.bf16 %v4224_v1 }
 0x10d   : > { %v3087_v6 = vunpack.i.h.bf16 %v3085_v15  ;;  %v3086_v25 = vunpack.i.l.bf16 %v3085_v15  ;;  %3379 = vrot.lane.b32.xlu1 %v4188_v27, %s3491_s18 }
 0x10e   : > { %3374 = vrot.lane.b32.xlu0 %v4144_v37, %s3491_s18  ;;  %v1744_v37 = vsel %vm1729_vm6, %v1711_v21, %v3071_v36 }
 0x10f   : > { %v1808_v60 = vsel %vm1795_vm8, %v1775_v12, %v3086_v25  ;;  %v1809_v19 = vsel %vm1795_vm8, %v1776_v51, %v3087_v6  ;;  %v3100_v20 = vpop.permute.xlu1 %3099  ;;  %v1777_v16 = vsel %vm1762_vm7, %v1744_v37, %v3081_v10 }
 0x110   : > { %v1834_v23 = vpack.c.bf16 %v1809_v19, %v1808_v60  ;;  %v3095_v55 = vpop.permute.xlu0 %3094  ;;  %v3102_v54 = vunpack.i.h.bf16 %v3100_v20  ;;  %v3101_v52 = vunpack.i.l.bf16 %v3100_v20 }
 0x111   : > { %v3097_v35 = vunpack.i.h.bf16 %v3095_v55  ;;  %v3096_v33 = vunpack.i.l.bf16 %v3095_v55  ;;  %3389 = vrot.lane.b32.xlu1 %v3388_v50, %s3492_s29 }
 0x112   : > { %3384 = vrot.lane.b32.xlu0 %v4167_v5, %s3492_s29  ;;  %2677 = vmatprep.mubr.msk.bf16.mxu0 %vm1864_vm9, %v1834_v23  ;;  %v1583_v38 = vsel %vm1564_vm1, %v268_v57, %v3101_v52  ;;  %v1584_v2 = vsel %vm1564_vm1, %v269_v46, %v3102_v54 }
 0x113   : > { %v1810_v44 = vsel %vm1795_vm8, %v1777_v16, %v3096_v33  ;;  %v1811_v45 = vsel %vm1795_vm8, %v1778_v9, %v3097_v35  ;;  %v3110_v13 = vpop.permute.xlu1 %3109 }
 0x114   : > { %v1835_v34 = vpack.c.bf16 %v1811_v45, %v1810_v44  ;;  %v3105_v0 = vpop.permute.xlu0 %3104  ;;  %v3112_v47 = vunpack.i.h.bf16 %v3110_v13  ;;  %v3111_v28 = vunpack.i.l.bf16 %v3110_v13 }
 0x115   : > { %3399 = vrot.lane.b32.xlu1 %v3398_v48, %s3493_s11  ;;  %v3107_v59 = vunpack.i.h.bf16 %v3105_v0 }
 0x116   : > { %3394 = vrot.lane.b32.xlu0 %v4186_v18, %s3493_s11  ;;  %2678 = vmatmul.mubr.msk.bf16.gmra.mrb[12].mxu0 %vm1864_vm9, %v1835_v34  ;;  %v3092_v18 = vunpack.i.h.bf16 %v4224_v1  ;;  %v1581_v1 = vsel %vm1564_vm1, %v266_v58, %v3091_v56  ;;  %v1616_v4 = vsel %vm1597_vm2, %v1583_v38, %v3111_v28  ;;  %v1617_v6 = vsel %vm1597_vm2, %v1584_v2, %v3112_v47 }
 0x117   : > { %v3120_v5 = vpop.permute.xlu1 %3119 }
 0x118   : > { %v3115_v24 = vpop.permute.xlu0 %3114  ;;  %v3122_v62 = vunpack.i.h.bf16 %v3120_v5  ;;  %v3121_v43 = vunpack.i.l.bf16 %v3120_v5  ;;  %v1582_v3 = vsel %vm1564_vm1, %v267_v49, %v3092_v18 }
 0x119   : > { %3409 = vrot.lane.b32.xlu1 %v3408_v7, %s3494_s12  ;;  %v3117_v36 = vunpack.i.h.bf16 %v3115_v24  ;;  %v3116_v15 = vunpack.i.l.bf16 %v3115_v24  ;;  %v1615_v63 = vsel %vm1597_vm2, %v1582_v3, %v3107_v59 }
 0x11a   : > { %3404 = vrot.lane.b32.xlu0 %v4188_v27, %s3494_s12  ;;  %v3106_v27 = vunpack.i.l.bf16 %v3105_v0  ;;  %v1649_v12 = vsel %vm1630_vm3, %v1616_v4, %v3121_v43  ;;  %v1650_v51 = vsel %vm1630_vm3, %v1617_v6, %v3122_v62  ;;  %s242_s12 = sand.u32 1, %s3477_s22  }
 0x11b   : > { %v4268_v50 = vpop.permute.xlu1 %3129  ;;  %v1648_v20 = vsel %vm1630_vm3, %v1615_v63, %v3117_v36  ;;  %s243_s14 = scalar_lea.vmem [#allocation2], %s242_s12  ;;  %s2345_s19 = scalar_lea.sflag [#allocation3], %s242_s12 }
 0x11c   : > { %v3125_v41 = vpop.permute.xlu0 %3124  ;;  %v1614_v25 = vsel %vm1597_vm2, %v1581_v1, %v3106_v27  ;;  %v3132_v23 = vunpack.i.h.bf16 %v4268_v50  ;;  %v3131_v55 = vunpack.i.l.bf16 %v4268_v50  ;;  %s2357_s15 = sshll.u32 %s243_s14, 4  ;;  %s4583_s15 = int_to_ptr.vmem [resolvable:$true] %s2357_s15 }
 0x11d   : > { %v3127_v8 = vunpack.i.h.bf16 %v3125_v41  ;;  %v3126_v40 = vunpack.i.l.bf16 %v3125_v41  ;;  %v1647_v19 = vsel %vm1630_vm3, %v1614_v25, %v3116_v15  ;;  %s3423_s20 = scalar_lea.vmem %s4583_s15, 16 }
 0x11e   : > { %v1683_v54 = vsel %vm1663_vm4, %v1650_v51, %v3132_v23  ;;  %v273_v51 = vld [vmem:[%s3587_s13 + $0x110] sm:$0xff]  ;;  %p3424_p11 = scmp.ne.s32.totalorder %s4583_s15, %s3423_s20 }
 0x11f   : > { %v4270_v53 = vpop.permute.xlu1 %3139  ;;  %v1680_v30 = vsel %vm1663_vm4, %v1647_v19, %v3126_v40  ;;  %v1681_v35 = vsel %vm1663_vm4, %v1648_v20, %v3127_v8  ;;  %v271_v19 = vld [vmem:[%s3587_s13 + $0xf8] sm:$0xff] }
 0x120   : > { %v3135_v31 = vpop.permute.xlu0 %3134  ;;  %v3142_v33 = vunpack.i.h.bf16 %v4270_v53  ;;  %v3141_v16 = vunpack.i.l.bf16 %v4270_v53  ;;  %p3425_p12 = pnand %p3424_p11, %p3572_p5 }
 0x121   : > { %v3137_v11 = vunpack.i.h.bf16 %v3135_v31  ;;  %v3136_v14 = vunpack.i.l.bf16 %v3135_v31  ;;  %v1682_v31 = vsel %vm1663_vm4, %v1649_v12, %v3131_v55  ;;  %v272_v12 = vld [vmem:[%s3587_s13 + $0x108] sm:$0xff] }
 0x122   : > { %v1715_v57 = vsel %vm1696_vm5, %v1682_v31, %v3141_v16  ;;  %v1716_v46 = vsel %vm1696_vm5, %v1683_v54, %v3142_v33  ;;  %p3426_p13 = pneg %p3425_p12 }
 0x123   : > { %v3150_v61 = vpop.permute.xlu1 %3149  ;;  %v1713_v39 = vsel %vm1696_vm5, %v1680_v30, %v3136_v14  ;;  %v1714_v42 = vsel %vm1696_vm5, %v1681_v35, %v3137_v11 }
 0x124   : > { %v3145_v32 = vpop.permute.xlu0 %3144  ;;  %v3152_v44 = vunpack.i.h.bf16 %v3150_v61  ;;  %v3151_v45 = vunpack.i.l.bf16 %v3150_v61 }
 0x125   : > { %v3147_v21 = vunpack.i.h.bf16 %v3145_v32  ;;  %v3146_v22 = vunpack.i.l.bf16 %v3145_v32 }
 0x126   : > { %v1748_v58 = vsel %vm1729_vm6, %v1715_v57, %v3151_v45  ;;  %v1749_v49 = vsel %vm1729_vm6, %v1716_v46, %v3152_v44 }
 0x127   : > { %v3160_v10 = vpop.permute.xlu1 %3159  ;;  %v1746_v34 = vsel %vm1729_vm6, %v1713_v39, %v3146_v22  ;;  %v1747_v0 = vsel %vm1729_vm6, %v1714_v42, %v3147_v21 }
 0x128   : > { %v3155_v60 = vpop.permute.xlu0 %3154  ;;  %v3162_v24 = vunpack.i.h.bf16 %v3160_v10  ;;  %v3161_v50 = vunpack.i.l.bf16 %v3160_v10 }
 0x129   : > { %v3157_v48 = vunpack.i.h.bf16 %v3155_v60  ;;  %v3156_v37 = vunpack.i.l.bf16 %v3155_v60  ;;  %v270_v60 = vld [vmem:[%s3587_s13 + $0xf0] sm:$0xff] }
 0x12a   : > { %v1781_v61 = vsel %vm1762_vm7, %v1748_v58, %v3161_v50  ;;  %v1782_v62 = vsel %vm1762_vm7, %v1749_v49, %v3162_v24 }
 0x12b   : > { %v4296_v9 = vpop.permute.xlu1 %3169  ;;  %v1779_v41 = vsel %vm1762_vm7, %v1746_v34, %v3156_v37  ;;  %v1780_v53 = vsel %vm1762_vm7, %v1747_v0, %v3157_v48 }
 0x12c   : > { %v3165_v13 = vpop.permute.xlu0 %3164  ;;  %v3172_v40 = vunpack.i.h.bf16 %v4296_v9  ;;  %v3171_v10 = vunpack.i.l.bf16 %v4296_v9 }
 0x12d   : > { %v3167_v7 = vunpack.i.h.bf16 %v3165_v13  ;;  %v3166_v5 = vunpack.i.l.bf16 %v3165_v13 }
 0x12e   : > { %v1585_v16 = vsel %vm1564_vm1, %v270_v60, %v3171_v10  ;;  %v1586_v9 = vsel %vm1564_vm1, %v271_v19, %v3172_v40 }
 0x12f   : > { %v1812_v52 = vsel %vm1795_vm8, %v1779_v41, %v3166_v5  ;;  %v1813_v18 = vsel %vm1795_vm8, %v1780_v53, %v3167_v7  ;;  %v3180_v56 = vpop.permute.xlu1 %3179 }
 0x130   : > { %v1836_v47 = vpack.c.bf16 %v1813_v18, %v1812_v52  ;;  %v3175_v28 = vpop.permute.xlu0 %3174  ;;  %v3182_v63 = vunpack.i.h.bf16 %v3180_v56  ;;  %v3181_v8 = vunpack.i.l.bf16 %v3180_v56 }
 0x131   : > { %v3177_v59 = vunpack.i.h.bf16 %v3175_v28  ;;  %v3176_v27 = vunpack.i.l.bf16 %v3175_v28 }
 0x132   : > { %2681 = vmatprep.mubr.msk.bf16.mxu0 %vm1864_vm9, %v1836_v47  ;;  %v1587_v37 = vsel %vm1564_vm1, %v272_v12, %v3181_v8  ;;  %v1588_v30 = vsel %vm1564_vm1, %v273_v51, %v3182_v63 }
 0x133   : > { %v1814_v43 = vsel %vm1795_vm8, %v1781_v61, %v3176_v27  ;;  %v1815_v32 = vsel %vm1795_vm8, %v1782_v62, %v3177_v59  ;;  %v3190_v38 = vpop.permute.xlu1 %3189 }
 0x134   : > { %v1837_v2 = vpack.c.bf16 %v1815_v32, %v1814_v43  ;;  %v3185_v36 = vpop.permute.xlu0 %3184  ;;  %v3192_v11 = vunpack.i.h.bf16 %v3190_v38  ;;  %v3191_v14 = vunpack.i.l.bf16 %v3190_v38 }
 0x135   : > { %v3187_v20 = vunpack.i.h.bf16 %v3185_v36  ;;  %v3186_v21 = vunpack.i.l.bf16 %v3185_v36 }
 0x136   : > { %2682 = vmatmul.mubr.msk.bf16.gmra.mrb[16].mxu0 %vm1864_vm9, %v1837_v2  ;;  %v1620_v39 = vsel %vm1597_vm2, %v1587_v37, %v3191_v14  ;;  %v1621_v42 = vsel %vm1597_vm2, %v1588_v30, %v3192_v11 }
 0x137   : > { %v3200_v15 = vpop.permute.xlu1 %3199  ;;  %v1618_v44 = vsel %vm1597_vm2, %v1585_v16, %v3186_v21  ;;  %v1619_v45 = vsel %vm1597_vm2, %v1586_v9, %v3187_v20 }
 0x138   : > { %v3195_v1 = vpop.permute.xlu0 %3194  ;;  %v3202_v23 = vunpack.i.h.bf16 %v3200_v15  ;;  %v3201_v55 = vunpack.i.l.bf16 %v3200_v15 }
 0x139   : > { %v3197_v35 = vunpack.i.h.bf16 %v3195_v1  ;;  %v3196_v33 = vunpack.i.l.bf16 %v3195_v1 }
 0x13a   : > { %v1653_v7 = vsel %vm1630_vm3, %v1620_v39, %v3201_v55  ;;  %v1654_v5 = vsel %vm1630_vm3, %v1621_v42, %v3202_v23 }
 0x13b   : > { %v4318_v3 = vpop.permute.xlu1 %3209  ;;  %v1651_v53 = vsel %vm1630_vm3, %v1618_v44, %v3196_v33  ;;  %v1652_v31 = vsel %vm1630_vm3, %v1619_v45, %v3197_v35 }
 0x13c   : > { %v3205_v4 = vpop.permute.xlu0 %3204  ;;  %v3212_v18 = vunpack.i.h.bf16 %v4318_v3  ;;  %v3211_v56 = vunpack.i.l.bf16 %v4318_v3 }
 0x13d   : > { %v3207_v13 = vunpack.i.h.bf16 %v3205_v4  ;;  %v3206_v34 = vunpack.i.l.bf16 %v3205_v4 }
 0x13e   : > { %v1687_v63 = vsel %vm1663_vm4, %v1654_v5, %v3212_v18 }
 0x13f   : > { %v4320_v6 = vpop.permute.xlu1 %3219  ;;  %v1684_v47 = vsel %vm1663_vm4, %v1651_v53, %v3206_v34  ;;  %v1685_v28 = vsel %vm1663_vm4, %v1652_v31, %v3207_v13 }
 0x140   : > { %v3215_v25 = vpop.permute.xlu0 %3214  ;;  %v3222_v58 = vunpack.i.h.bf16 %v4320_v6  ;;  %v3221_v49 = vunpack.i.l.bf16 %v4320_v6 }
 0x141   : > { %v3217_v24 = vunpack.i.h.bf16 %v3215_v25  ;;  %v3216_v50 = vunpack.i.l.bf16 %v3215_v25  ;;  %v1686_v25 = vsel %vm1663_vm4, %v1653_v7, %v3211_v56  ;;  %v3420_v56 = vld [vmem:[%s3587_s13 + $0x138] sm:$0xff] }
 0x142   : > { %v1719_v12 = vsel %vm1696_vm5, %v1686_v25, %v3221_v49  ;;  %v1720_v51 = vsel %vm1696_vm5, %v1687_v63, %v3222_v58 }
 0x143   : > { %v3230_v22 = vpop.permute.xlu1 %3229  ;;  %v1717_v27 = vsel %vm1696_vm5, %v1684_v47, %v3216_v50  ;;  %v1718_v61 = vsel %vm1696_vm5, %v1685_v28, %v3217_v24  ;;  %v274_v24 = vld [vmem:[%s3587_s13 + $0x120] sm:$0xff]  ;;  %v275_v50 = vld [vmem:[%s3587_s13 + $0x128] sm:$0xff] }
 0x144   : > { %v3225_v48 = vpop.permute.xlu0 %3224  ;;  %v3232_v62 = vunpack.i.h.bf16 %v3230_v22  ;;  %v3231_v43 = vunpack.i.l.bf16 %v3230_v22 }
 0x145   : > { %v3227_v54 = vunpack.i.h.bf16 %v3225_v48  ;;  %v3226_v52 = vunpack.i.l.bf16 %v3225_v48 }
 0x146   : > { %v1752_v60 = vsel %vm1729_vm6, %v1719_v12, %v3231_v43  ;;  %v1753_v19 = vsel %vm1729_vm6, %v1720_v51, %v3232_v62 }
 0x147   : > { %v3240_v0 = vpop.permute.xlu1 %3239  ;;  %v1750_v38 = vsel %vm1729_vm6, %v1717_v27, %v3226_v52  ;;  %v1751_v2 = vsel %vm1729_vm6, %v1718_v61, %v3227_v54 }
 0x148   : > { %v3235_v41 = vpop.permute.xlu0 %3234  ;;  %v3242_v1 = vunpack.i.h.bf16 %v3240_v0  ;;  %v3241_v3 = vunpack.i.l.bf16 %v3240_v0 }
 0x149   : > { %v3237_v57 = vunpack.i.h.bf16 %v3235_v41  ;;  %v3236_v46 = vunpack.i.l.bf16 %v3235_v41 }
 0x14a   : > { %v1785_v22 = vsel %vm1762_vm7, %v1752_v60, %v3241_v3  ;;  %v1786_v23 = vsel %vm1762_vm7, %v1753_v19, %v3242_v1 }
 0x14b   : > { %v4346_v59 = vpop.permute.xlu1 %3249  ;;  %v1783_v4 = vsel %vm1762_vm7, %v1750_v38, %v3236_v46  ;;  %v1784_v6 = vsel %vm1762_vm7, %v1751_v2, %v3237_v57  ;;  %v3421_v46 = vld [vmem:[%s3587_s13 + $0x140] sm:$0xff] }
 0x14c   : > { %v3245_v32 = vpop.permute.xlu0 %3244  ;;  %v3252_v34 = vunpack.i.h.bf16 %v4346_v59  ;;  %v3251_v0 = vunpack.i.l.bf16 %v4346_v59 }
 0x14d   : > { %v3247_v36 = vunpack.i.h.bf16 %v3245_v32  ;;  %v3246_v15 = vunpack.i.l.bf16 %v3245_v32 }
 0x14e   : > { %v1589_v49 = vsel %vm1564_vm1, %v274_v24, %v3251_v0  ;;  %v1590_v59 = vsel %vm1564_vm1, %v275_v50, %v3252_v34 }
 0x14f   : > { %v3260_v8 = vpop.permute.xlu1 %3259  ;;  %v1816_v40 = vsel %vm1795_vm8, %v1783_v4, %v3246_v15  ;;  %v1817_v10 = vsel %vm1795_vm8, %v1784_v6, %v3247_v36 }
 0x150   : > { %v3255_v11 = vpop.permute.xlu0 %3254  ;;  %v1838_v14 = vpack.c.bf16 %v1817_v10, %v1816_v40  ;;  %v3262_v45 = vunpack.i.h.bf16 %v3260_v8  ;;  %v3261_v13 = vunpack.i.l.bf16 %v3260_v8 }
 0x151   : > { %v3257_v20 = vunpack.i.h.bf16 %v3255_v11  ;;  %v3256_v21 = vunpack.i.l.bf16 %v3255_v11 }
 0x152   : > { %2685 = vmatprep.mubr.msk.bf16.mxu1 %vm1864_vm9, %v1838_v14  ;;  %v1591_v57 = vsel %vm1564_vm1, %v3420_v56, %v3261_v13  ;;  %v1592_v47 = vsel %vm1564_vm1, %v3421_v46, %v3262_v45 }
 0x153   : > { %v1818_v55 = vsel %vm1795_vm8, %v1785_v22, %v3256_v21  ;;  %v1819_v48 = vsel %vm1795_vm8, %v1786_v23, %v3257_v20  ;;  %v3270_v37 = vpop.permute.xlu1 %3269 }
 0x154   : > { %v1839_v30 = vpack.c.bf16 %v1819_v48, %v1818_v55  ;;  %v3265_v35 = vpop.permute.xlu0 %3264  ;;  %v3272_v7 = vunpack.i.h.bf16 %v3270_v37  ;;  %v3271_v5 = vunpack.i.l.bf16 %v3270_v37 }
 0x155   : > { %v3267_v41 = vunpack.i.h.bf16 %v3265_v35  ;;  %v3266_v53 = vunpack.i.l.bf16 %v3265_v35 }
 0x156   : > { %2686 = vmatmul.mubr.msk.bf16.vlgmr.msra.gmra.mrb[0].mxu1 %vm1864_vm9, %v1839_v30  ;;  %v1624_v27 = vsel %vm1597_vm2, %v1591_v57, %v3271_v5  ;;  %v1625_v61 = vsel %vm1597_vm2, %v1592_v47, %v3272_v7 }
 0x157   : > { %v3280_v33 = vpop.permute.xlu1 %3279  ;;  %v1622_v62 = vsel %vm1597_vm2, %v1589_v49, %v3266_v53  ;;  %v1623_v43 = vsel %vm1597_vm2, %v1590_v59, %v3267_v41 }
 0x158   : > { %v3275_v16 = vpop.permute.xlu0 %3274  ;;  %v3282_v54 = vunpack.i.h.bf16 %v3280_v33  ;;  %v3281_v52 = vunpack.i.l.bf16 %v3280_v33 }
 0x159   : > { %v3277_v28 = vunpack.i.h.bf16 %v3275_v16  ;;  %v3276_v58 = vunpack.i.l.bf16 %v3275_v16 }
 0x15a   : > { %v1657_v36 = vsel %vm1630_vm3, %v1624_v27, %v3281_v52  ;;  %v1658_v15 = vsel %vm1630_vm3, %v1625_v61, %v3282_v54 }
 0x15b   : > { %v4368_v9 = vpop.permute.xlu1 %3289  ;;  %v1655_v6 = vsel %vm1630_vm3, %v1622_v62, %v3276_v58  ;;  %v1656_v25 = vsel %vm1630_vm3, %v1623_v43, %v3277_v28 }
 0x15c   : > { %v3285_v39 = vpop.permute.xlu0 %3284  ;;  %v3292_v40 = vunpack.i.h.bf16 %v4368_v9  ;;  %v3291_v10 = vunpack.i.l.bf16 %v4368_v9 }
 0x15d   : > { %v3287_v32 = vunpack.i.h.bf16 %v3285_v39  ;;  %v3286_v38 = vunpack.i.l.bf16 %v3285_v39 }
 0x15e   : > { %v1691_v45 = vsel %vm1663_vm4, %v1658_v15, %v3292_v40 }
 0x15f   : > { %v4370_v42 = vpop.permute.xlu1 %3299  ;;  %v1688_v11 = vsel %vm1663_vm4, %v1655_v6, %v3286_v38  ;;  %v1689_v14 = vsel %vm1663_vm4, %v1656_v25, %v3287_v32 }
 0x160   : > { %v3295_v44 = vpop.permute.xlu0 %3294  ;;  %v3302_v60 = vunpack.i.h.bf16 %v4370_v42  ;;  %v3301_v19 = vunpack.i.l.bf16 %v4370_v42 }
 0x161   : > { %v3297_v1 = vunpack.i.h.bf16 %v3295_v44  ;;  %v3296_v3 = vunpack.i.l.bf16 %v3295_v44  ;;  %v1690_v44 = vsel %vm1663_vm4, %v1657_v36, %v3291_v10 }
 0x162   : > { %v1723_v7 = vsel %vm1696_vm5, %v1690_v44, %v3301_v19  ;;  %v1724_v5 = vsel %vm1696_vm5, %v1691_v45, %v3302_v60 }
 0x163   : > { %v3310_v31 = vpop.permute.xlu1 %3309  ;;  %v1721_v21 = vsel %vm1696_vm5, %v1688_v11, %v3296_v3  ;;  %v1722_v22 = vsel %vm1696_vm5, %v1689_v14, %v3297_v1 }
 0x164   : > { %v3305_v18 = vpop.permute.xlu0 %3304  ;;  %v3312_v23 = vunpack.i.h.bf16 %v3310_v31  ;;  %v3311_v55 = vunpack.i.l.bf16 %v3310_v31 }
 0x165   : > { %v3307_v63 = vunpack.i.h.bf16 %v3305_v18  ;;  %v3306_v8 = vunpack.i.l.bf16 %v3305_v18 }
 0x166   : > { %v1756_v41 = vsel %vm1729_vm6, %v1723_v7, %v3311_v55  ;;  %v1757_v53 = vsel %vm1729_vm6, %v1724_v5, %v3312_v23  ;;  %v4439_v5 = vld [vmem:[%s4625_s2] ss:$0 sm:$0xff] }
 0x167   : > { %v3320_v2 = vpop.permute.xlu1 %3319  ;;  %v1754_v37 = vsel %vm1729_vm6, %v1721_v21, %v3306_v8  ;;  %v1755_v30 = vsel %vm1729_vm6, %v1722_v22, %v3307_v63  ;;  %v3422_v8 = vld [vmem:[%s3587_s13 + $0x158] sm:$0xff]  ;;  %s2632_s13 = sshll.u32 %s3555_s25, 4  ;;  %s3498_s25 = smov [#allocation2]  }
 0x168   : > { %v3315_v4 = vpop.permute.xlu0 %3314  ;;  %v3322_v16 = vunpack.i.h.bf16 %v3320_v2  ;;  %v3321_v9 = vunpack.i.l.bf16 %v3320_v2  ;;  %s4581_s18 = scalar_lea.hbm %s4629_s6, %s2632_s13  ;;  %s3427_s26 = sshll.u32 %s3498_s25, 4  ;;  %s3428_s26 = int_to_ptr.vmem [resolvable:$false] %s3427_s26 }
 0x169   : > { %v3317_v12 = vunpack.i.h.bf16 %v3315_v4  ;;  %v3316_v51 = vunpack.i.l.bf16 %v3315_v4  ;;  %s3429_s28 = scalar_lea.vmem %s3428_s26, 32  ;;  %p3430_p0 = scmp.lt.s32.totalorder %s4583_s15, %s3428_s26 }
 0x16a   : > { %v1789_v52 = vsel %vm1762_vm7, %v1756_v41, %v3321_v9  ;;  %v1790_v18 = vsel %vm1762_vm7, %v1757_v53, %v3322_v16  ;;  %p3431_p1 = scmp.lt.s32.totalorder %s3429_s28, %s3423_s20 }
 0x16b   : > { %v3330_v20 = vpop.permute.xlu1 %3329  ;;  %v1787_v39 = vsel %vm1762_vm7, %v1754_v37, %v3316_v51  ;;  %v1788_v42 = vsel %vm1762_vm7, %v1755_v30, %v3317_v12 }
 0x16c   : > { %v3325_v48 = vpop.permute.xlu0 %3324  ;;  %v3331_v27 = vunpack.i.l.bf16 %v3330_v20  ;;  %v3332_v43 = vunpack.i.h.bf16 %v3330_v20  ;;  %p3432_p2 = por %p3431_p1, %p3430_p0 }
 0x16d   : > { %v3327_v35 = vunpack.i.h.bf16 %v3325_v48  ;;  %v3326_v33 = vunpack.i.l.bf16 %v3325_v48 }
 0x16e   : > { %v1593_v3 = vsel %vm1564_vm1, %v4022_v17, %v3331_v27  ;;  %v1594_v40 = vsel %vm1564_vm1, %v3422_v8, %v3332_v43  ;;  %p3433_p3 = pnand %p3432_p2, %p3426_p13 }
 0x16f   : > { %v1820_v13 = vsel %vm1795_vm8, %v1787_v39, %v3326_v33  ;;  %v1821_v34 = vsel %vm1795_vm8, %v1788_v42, %v3327_v35  ;;  %v3340_v0 = vpop.permute.xlu1 %3339 }
 0x170   : > { %v1840_v24 = vpack.c.bf16 %v1821_v34, %v1820_v13  ;;  %v3335_v50 = vpop.permute.xlu0 %3334  ;;  %v3341_v61 = vunpack.i.l.bf16 %v3340_v0  ;;  %v3342_v32 = vunpack.i.h.bf16 %v3340_v0 }
 0x171   : > { %v3337_v31 = vunpack.i.h.bf16 %v3335_v50  ;;  %v3336_v54 = vunpack.i.l.bf16 %v3335_v50 }
 0x172   : > { %2689 = vmatprep.mubr.msk.bf16.mxu1 %vm1864_vm9, %v1840_v24  ;;  %v1595_v4 = vsel %vm1564_vm1, %v4041_v26, %v3341_v61  ;;  %v1596_v10 = vsel %vm1564_vm1, %v4044_v29, %v3342_v32 }
 0x173   : > { %v1822_v56 = vsel %vm1795_vm8, %v1789_v52, %v3336_v54  ;;  %v1823_v57 = vsel %vm1795_vm8, %v1790_v18, %v3337_v31  ;;  %v3350_v46 = vpop.permute.xlu1 %3349 }
 0x174   : > { %v1841_v47 = vpack.c.bf16 %v1823_v57, %v1822_v56  ;;  %v3345_v28 = vpop.permute.xlu0 %3344  ;;  %v3351_v38 = vunpack.i.l.bf16 %v3350_v46  ;;  %v3352_v2 = vunpack.i.h.bf16 %v3350_v46 }
 0x175   : > { %v3346_v36 = vunpack.i.l.bf16 %v3345_v28  ;;  %v3347_v15 = vunpack.i.h.bf16 %v3345_v28 }
 0x176   : > { %2690 = vmatmul.mubr.msk.bf16.gmra.mrb[4].mxu1 %vm1864_vm9, %v1841_v47  ;;  %v1628_v12 = vsel %vm1597_vm2, %v1595_v4, %v3351_v38  ;;  %v1629_v11 = vsel %vm1597_vm2, %v1596_v10, %v3352_v2 }
 0x177   : > { %v3360_v58 = vpop.permute.xlu1 %3359  ;;  %v1626_v14 = vsel %vm1597_vm2, %v1593_v3, %v3346_v36  ;;  %v1627_v26 = vsel %vm1597_vm2, %v1594_v40, %v3347_v15 }
 0x178   : > { %v3355_v49 = vpop.permute.xlu0 %3354  ;;  %v3362_v6 = vunpack.i.h.bf16 %v3360_v58  ;;  %v3361_v25 = vunpack.i.l.bf16 %v3360_v58 }
 0x179   : > { %v3356_v51 = vunpack.i.l.bf16 %v3355_v49  ;;  %v3357_v17 = vunpack.i.h.bf16 %v3355_v49  ;;  %v4452_v49 = vld [vmem:[%s4626_s3] ss:$0 sm:$0xff] }
 0x17a   : > { %v1661_v23 = vsel %vm1630_vm3, %v1628_v12, %v3361_v25  ;;  %v1662_v55 = vsel %vm1630_vm3, %v1629_v11, %v3362_v6 }
 0x17b   : > { %v3370_v59 = vpop.permute.xlu1 %3369  ;;  %v1659_v30 = vsel %vm1630_vm3, %v1626_v14, %v3356_v51  ;;  %v1660_v9 = vsel %vm1630_vm3, %v1627_v26, %v3357_v17 }
 0x17c   : > { %v3365_v62 = vpop.permute.xlu0 %3364  ;;  %v3371_v60 = vunpack.i.l.bf16 %v3370_v59  ;;  %v3372_v19 = vunpack.i.h.bf16 %v3370_v59 }
 0x17d   : > { %v3367_v20 = vunpack.i.h.bf16 %v3365_v62  ;;  %v3366_v21 = vunpack.i.l.bf16 %v3365_v62 }
 0x17e   : > { %v1694_v39 = vsel %vm1663_vm4, %v1661_v23, %v3371_v60  ;;  %v1695_v45 = vsel %vm1663_vm4, %v1662_v55, %v3372_v19 }
 0x17f   : > { %v3380_v1 = vpop.permute.xlu1 %3379  ;;  %v1692_v13 = vsel %vm1663_vm4, %v1659_v30, %v3366_v21  ;;  %v1693_v34 = vsel %vm1663_vm4, %v1660_v9, %v3367_v20 }
 0x180   : > { %v3375_v63 = vpop.permute.xlu0 %3374  ;;  %v3382_v29 = vunpack.i.h.bf16 %v3380_v1  ;;  %v3381_v48 = vunpack.i.l.bf16 %v3380_v1 }
 0x181   : > { %v3377_v35 = vunpack.i.h.bf16 %v3375_v63  ;;  %v3376_v33 = vunpack.i.l.bf16 %v3375_v63 }
 0x182   : > { %v1727_v24 = vsel %vm1696_vm5, %v1694_v39, %v3381_v48  ;;  %v1728_v50 = vsel %vm1696_vm5, %v1695_v45, %v3382_v29 }
 0x183   : > { %v3390_v22 = vpop.permute.xlu1 %3389  ;;  %v1725_v54 = vsel %vm1696_vm5, %v1692_v13, %v3376_v33  ;;  %v1726_v52 = vsel %vm1696_vm5, %v1693_v34, %v3377_v35 }
 0x184   : > { %v3385_v37 = vpop.permute.xlu0 %3384  ;;  %v3391_v16 = vunpack.i.l.bf16 %v3390_v22  ;;  %v3392_v42 = vunpack.i.h.bf16 %v3390_v22 }
 0x185   : > { %v3386_v44 = vunpack.i.l.bf16 %v3385_v37  ;;  %v3387_v0 = vunpack.i.h.bf16 %v3385_v37 }
 0x186   : > { %v1760_v18 = vsel %vm1729_vm6, %v1727_v24, %v3391_v16  ;;  %v1761_v46 = vsel %vm1729_vm6, %v1728_v50, %v3392_v42 }
 0x187   : > { %v3400_v7 = vpop.permute.xlu1 %3399  ;;  %v1758_v47 = vsel %vm1729_vm6, %v1725_v54, %v3386_v44  ;;  %v1759_v27 = vsel %vm1729_vm6, %v1726_v52, %v3387_v0 }
 0x188   : > { %v3402_v41 = vunpack.i.h.bf16 %v3400_v7  ;;  %v3401_v53 = vunpack.i.l.bf16 %v3400_v7  ;;  %v3395_v31 = vpop.permute.xlu0 %3394 }
 0x189   : > { %v3396_v56 = vunpack.i.l.bf16 %v3395_v31  ;;  %v2667_v57 = vpop.f32.mrb[0].mxu0  ;;  %v3397_v28 = vunpack.i.h.bf16 %v3395_v31 }
 0x18a   : > { %v2087_v58 = vmul.f32 %v2667_v57, %v4439_v5  ;;  %v1951_v59 = vpop.f32.mrb[1].mxu0  ;;  %v1793_v61 = vsel %vm1762_vm7, %v1760_v18, %v3401_v53  ;;  %v1794_v62 = vsel %vm1762_vm7, %v1761_v46, %v3402_v41 }
 0x18b   : > { %v2085_v43 = vmul.f32 %v4439_v5, %v1951_v59  ;;  %v2668_v32 = vpop.f32.mrb[2].mxu0  ;;  %v3410_v38 = vpop.permute.xlu1 %3409  ;;  %v1791_v2 = vsel %vm1762_vm7, %v1758_v47, %v3396_v56  ;;  %v1792_v40 = vsel %vm1762_vm7, %v1759_v27, %v3397_v28 }
 0x18c   : > { %v2088_v36 = vmul.f32 %v2668_v32, %v4439_v5  ;;  %v3412_v15 = vunpack.i.h.bf16 %v3410_v38  ;;  %v3411_v1 = vunpack.i.l.bf16 %v3410_v38  ;;  %v3405_v3 = vpop.permute.xlu0 %3404  ;;  %v1954_v4 = vpop.f32.mrb[3].mxu0  ;;  %v2126_v10 = vadd.f32 %v4452_v49, %v2087_v58 }
 0x18d   : > { %v2124_v6 = vadd.f32 %v4452_v49, %v2085_v43  ;;  %v3407_v25 = vunpack.i.h.bf16 %v3405_v3  ;;  %v3406_v63 = vunpack.i.l.bf16 %v3405_v3  ;;  %v2086_v8 = vmul.f32 %v4439_v5, %v1954_v4 }
 0x18e   : > { %v1826_v12 = vsel %vm1795_vm8, %v1793_v61, %v3411_v1  ;;  %v1827_v51 = vsel %vm1795_vm8, %v1794_v62, %v3412_v15  ;;  %v2127_v26 = vadd.f32 %v4452_v49, %v2088_v36  ;;  %v2158_v21 = vmax.f32 %v2126_v10, 0.0 }
 0x18f   : > { %v1843_v11 = vpack.c.bf16 %v1827_v51, %v1826_v12  ;;  %v1824_v14 = vsel %vm1795_vm8, %v1791_v2, %v3406_v63  ;;  %v1825_v17 = vsel %vm1795_vm8, %v1792_v40, %v3407_v25  ;;  %v2156_v60 = vmax.f32 %v2124_v6, 0.0 }
 0x190   : > { %v1842_v19 = vpack.c.bf16 %v1825_v17, %v1824_v14  ;;  %v2125_v20 = vadd.f32 %v4452_v49, %v2086_v8  ;;  %v2159_v55 = vmax.f32 %v2127_v26, 0.0  ;;  %v2191_v37 = vsel %vm1795_vm8, %v2158_v21, 0.0 }
 0x191   : > { %v2188_v23 = vsel %vm1795_vm8, %v2156_v60, 0.0 }
 0x192   : > { %v2157_v22 = vmax.f32 %v2125_v20, 0.0  ;;  %2693 = vmatprep.mubr.msk.bf16.mxu1 %vm1864_vm9, %v1842_v19  ;;  %v2193_v35 = vsel %vm1795_vm8, %v2159_v55, 0.0 }
 0x193   : > { %2694 = vmatmul.mubr.msk.bf16.gmra.mrb[8].mxu1 %vm1864_vm9, %v1843_v11 }
 0x194   : > { %v2189_v29 = vsel %vm1795_vm8, %v2157_v22, 0.0 }
 0x195   : > { %v2190_v48 = vadd.f32 %v2189_v29, %v2188_v23 }
 0x197   : > { %v2192_v30 = vadd.f32 %v2191_v37, %v2190_v48 }
 0x199   : > { %v2194_v33 = vadd.f32 %v2193_v35, %v2192_v30 }
 0x1a9   : > { %v2671_v16 = vpop.f32.mrb[4].mxu0 }
 0x1aa   : > { %v2091_v9 = vmul.f32 %v2671_v16, %v4439_v5  ;;  %v1967_v39 = vpop.f32.mrb[5].mxu0 }
 0x1ab   : > { %v2089_v42 = vmul.f32 %v4439_v5, %v1967_v39  ;;  %v2672_v44 = vpop.f32.mrb[6].mxu0 }
 0x1ac   : > { %v2092_v45 = vmul.f32 %v2672_v44, %v4439_v5  ;;  %v1970_v13 = vpop.f32.mrb[7].mxu0  ;;  %v2130_v34 = vadd.f32 %v4452_v49, %v2091_v9 }
 0x1ad   : > { %v2128_v0 = vadd.f32 %v4452_v49, %v2089_v42  ;;  %v2090_v7 = vmul.f32 %v4439_v5, %v1970_v13 }
 0x1ae   : > { %v2131_v50 = vadd.f32 %v4452_v49, %v2092_v45  ;;  %v2162_v53 = vmax.f32 %v2130_v34, 0.0 }
 0x1af   : > { %v2160_v24 = vmax.f32 %v2128_v0, 0.0  ;;  %v2129_v41 = vadd.f32 %v4452_v49, %v2090_v7 }
 0x1b0   : > { %v2163_v18 = vmax.f32 %v2131_v50, 0.0  ;;  %v2199_v46 = vsel %vm1795_vm8, %v2162_v53, 0.0  ;;  %v2259_v50 = vld [vmem:[%s4627_s4 + $0x8] sm:$0xff]  ;;  %v3495_v53 = vmov 0.0|0.0  }
 0x1b1   : > { %v2195_v31 = vsel %vm1795_vm8, %v2160_v24, 0.0  ;;  %v2161_v54 = vmax.f32 %v2129_v41, 0.0  ;;  %v2258_v24 = vld [vmem:[%s4627_s4] sm:$0xff]  ;;  %2708 = vmatprep.subr.bf16.mxu1 %v3495_v53 }
 0x1b2   : > { %v2196_v52 = vadd.f32 %v2195_v31, %v2194_v33  ;;  %v2201_v28 = vsel %vm1795_vm8, %v2163_v18, 0.0  ;;  %v2709_v41 = vpack.c.bf16 %v2259_v50, %v2258_v24  ;;  %v2260_v31 = vld [vmem:[%s4627_s4 + $0x10] sm:$0xff]  ;;  %v3497_v18 = vmov 0.0  }
 0x1b3   : > { %v2197_v56 = vsel %vm1795_vm8, %v2161_v54, 0.0  ;;  %v2261_v54 = vld [vmem:[%s4627_s4 + $0x18] sm:$0xff]  ;;  %2705 = vmatprep.mubr.msk.f32.mxu1 %vm3496_vm10, %v3497_v18 }
 0x1b4   : > { %v2198_v57 = vadd.f32 %v2197_v56, %v2196_v52  ;;  %2710 = vmatpush3.bf16.msra.mxu1 %v2709_v41  ;;  %v2712_v52 = vpack.c.bf16 %v2261_v54, %v2260_v31 }
 0x1b5   : > { %2711 = vmatprep.subr.bf16.mxu1 %v3495_v53 }
 0x1b6   : > { %v2200_v47 = vadd.f32 %v2199_v46, %v2198_v57 }
 0x1b8   : > { %v2202_v58 = vadd.f32 %v2201_v28, %v2200_v47  ;;  %2713 = vmatpush3.bf16.msra.mxu1 %v2712_v52 }
 0x1c9   : > { %v2675_v59 = vpop.f32.mrb[8].mxu0 }
 0x1ca   : > { %v2095_v27 = vmul.f32 %v2675_v59, %v4439_v5  ;;  %v1983_v61 = vpop.f32.mrb[9].mxu0 }
 0x1cb   : > { %v2093_v62 = vmul.f32 %v4439_v5, %v1983_v61  ;;  %v2676_v43 = vpop.f32.mrb[10].mxu0 }
 0x1cc   : > { %v2096_v32 = vmul.f32 %v2676_v43, %v4439_v5  ;;  %v1986_v38 = vpop.f32.mrb[11].mxu0  ;;  %v2134_v2 = vadd.f32 %v4452_v49, %v2095_v27 }
 0x1cd   : > { %v2132_v36 = vadd.f32 %v4452_v49, %v2093_v62  ;;  %v2094_v15 = vmul.f32 %v4439_v5, %v1986_v38 }
 0x1ce   : > { %v2135_v3 = vadd.f32 %v4452_v49, %v2096_v32  ;;  %v2166_v6 = vmax.f32 %v2134_v2, 0.0 }
 0x1cf   : > { %v2164_v1 = vmax.f32 %v2132_v36, 0.0  ;;  %v2133_v4 = vadd.f32 %v4452_v49, %v2094_v15 }
 0x1d0   : > { %v2167_v40 = vmax.f32 %v2135_v3, 0.0  ;;  %v2207_v51 = vsel %vm1795_vm8, %v2166_v6, 0.0 }
 0x1d1   : > { %v2203_v25 = vsel %vm1795_vm8, %v2164_v1, 0.0  ;;  %v2165_v63 = vmax.f32 %v2133_v4, 0.0 }
 0x1d2   : > { %v2204_v8 = vadd.f32 %v2203_v25, %v2202_v58  ;;  %v2209_v14 = vsel %vm1795_vm8, %v2167_v40, 0.0 }
 0x1d3   : > { %v2205_v10 = vsel %vm1795_vm8, %v2165_v63, 0.0 }
 0x1d4   : > { %v2206_v12 = vadd.f32 %v2205_v10, %v2204_v8 }
 0x1d6   : > { %v2208_v11 = vadd.f32 %v2207_v51, %v2206_v12 }
 0x1d8   : > { %v2210_v17 = vadd.f32 %v2209_v14, %v2208_v11 }
 0x1e9   : > { %v2679_v60 = vpop.f32.mrb[12].mxu0 }
 0x1ea   : > { %v2099_v26 = vmul.f32 %v2679_v60, %v4439_v5  ;;  %v1999_v19 = vpop.f32.mrb[13].mxu0 }
 0x1eb   : > { %v2097_v20 = vmul.f32 %v4439_v5, %v1999_v19  ;;  %v2680_v21 = vpop.f32.mrb[14].mxu0 }
 0x1ec   : > { %v2100_v22 = vmul.f32 %v2680_v21, %v4439_v5  ;;  %v2002_v23 = vpop.f32.mrb[15].mxu0  ;;  %v2138_v55 = vadd.f32 %v4452_v49, %v2099_v26 }
 0x1ed   : > { %v2136_v29 = vadd.f32 %v4452_v49, %v2097_v20  ;;  %v2098_v48 = vmul.f32 %v4439_v5, %v2002_v23 }
 0x1ee   : > { %v2139_v30 = vadd.f32 %v4452_v49, %v2100_v22  ;;  %v2170_v33 = vmax.f32 %v2138_v55, 0.0 }
 0x1ef   : > { %v2168_v37 = vmax.f32 %v2136_v29, 0.0  ;;  %v2137_v35 = vadd.f32 %v4452_v49, %v2098_v48 }
 0x1f0   : > { %v2171_v42 = vmax.f32 %v2139_v30, 0.0  ;;  %v2215_v13 = vsel %vm1795_vm8, %v2170_v33, 0.0 }
 0x1f1   : > { %v2211_v16 = vsel %vm1795_vm8, %v2168_v37, 0.0  ;;  %v2169_v9 = vmax.f32 %v2137_v35, 0.0 }
 0x1f2   : > { %v2212_v39 = vadd.f32 %v2211_v16, %v2210_v17  ;;  %v2217_v0 = vsel %vm1795_vm8, %v2171_v42, 0.0 }
 0x1f3   : > { %v2213_v44 = vsel %vm1795_vm8, %v2169_v9, 0.0 }
 0x1f4   : > { %v2214_v45 = vadd.f32 %v2213_v44, %v2212_v39 }
 0x1f6   : > { %v2216_v34 = vadd.f32 %v2215_v13, %v2214_v45 }
 0x1f8   : > { %v2218_v7 = vadd.f32 %v2217_v0, %v2216_v34 }
 0x209   : > { %v2683_v56 = vpop.f32.mrb[16].mxu0 }
 0x20a   : > { %v2103_v57 = vmul.f32 %v2683_v56, %v4439_v5  ;;  %v2015_v46 = vpop.f32.mrb[17].mxu0 }
 0x20b   : > { %v2101_v47 = vmul.f32 %v4439_v5, %v2015_v46  ;;  %v2684_v28 = vpop.f32.mrb[18].mxu0 }
 0x20c   : > { %v2104_v58 = vmul.f32 %v2684_v28, %v4439_v5  ;;  %v2018_v59 = vpop.f32.mrb[19].mxu0  ;;  %v2142_v27 = vadd.f32 %v4452_v49, %v2103_v57 }
 0x20d   : > { %v2140_v61 = vadd.f32 %v4452_v49, %v2101_v47  ;;  %v2102_v62 = vmul.f32 %v4439_v5, %v2018_v59 }
 0x20e   : > { %v2143_v32 = vadd.f32 %v4452_v49, %v2104_v58  ;;  %v2174_v2 = vmax.f32 %v2142_v27, 0.0 }
 0x20f   : > { %v2172_v43 = vmax.f32 %v2140_v61, 0.0  ;;  %v2141_v38 = vadd.f32 %v4452_v49, %v2102_v62 }
 0x210   : > { %v2175_v3 = vmax.f32 %v2143_v32, 0.0  ;;  %v2223_v25 = vsel %vm1795_vm8, %v2174_v2, 0.0 }
 0x211   : > { %v2219_v36 = vsel %vm1795_vm8, %v2172_v43, 0.0  ;;  %v2173_v15 = vmax.f32 %v2141_v38, 0.0 }
 0x212   : > { %v2220_v1 = vadd.f32 %v2219_v36, %v2218_v7  ;;  %v2225_v8 = vsel %vm1795_vm8, %v2175_v3, 0.0 }
 0x213   : > { %v2221_v4 = vsel %vm1795_vm8, %v2173_v15, 0.0 }
 0x214   : > { %v2222_v6 = vadd.f32 %v2221_v4, %v2220_v1 }
 0x216   : > { %v2224_v63 = vadd.f32 %v2223_v25, %v2222_v6 }
 0x218   : > { %v2226_v40 = vadd.f32 %v2225_v8, %v2224_v63 }
 0x229   : > { %v2687_v10 = vpop.f32.mrb[0].mxu1 }
 0x22a   : > { %v2107_v12 = vmul.f32 %v2687_v10, %v4439_v5  ;;  %v2031_v51 = vpop.f32.mrb[1].mxu1 }
 0x22b   : > { %v2105_v11 = vmul.f32 %v4439_v5, %v2031_v51  ;;  %v2688_v14 = vpop.f32.mrb[2].mxu1 }
 0x22c   : > { %v2108_v17 = vmul.f32 %v2688_v14, %v4439_v5  ;;  %v2034_v60 = vpop.f32.mrb[3].mxu1  ;;  %v2146_v26 = vadd.f32 %v4452_v49, %v2107_v12 }
 0x22d   : > { %v2144_v19 = vadd.f32 %v4452_v49, %v2105_v11  ;;  %v2106_v20 = vmul.f32 %v4439_v5, %v2034_v60 }
 0x22e   : > { %v2147_v22 = vadd.f32 %v4452_v49, %v2108_v17  ;;  %v2178_v55 = vmax.f32 %v2146_v26, 0.0 }
 0x22f   : > { %v2176_v21 = vmax.f32 %v2144_v19, 0.0  ;;  %v2145_v23 = vadd.f32 %v4452_v49, %v2106_v20 }
 0x230   : > { %v2179_v30 = vmax.f32 %v2147_v22, 0.0  ;;  %v2231_v16 = vsel %vm1795_vm8, %v2178_v55, 0.0 }
 0x231   : > { %v2227_v29 = vsel %vm1795_vm8, %v2176_v21, 0.0  ;;  %v2177_v48 = vmax.f32 %v2145_v23, 0.0 }
 0x232   : > { %v2228_v37 = vadd.f32 %v2227_v29, %v2226_v40  ;;  %v2233_v39 = vsel %vm1795_vm8, %v2179_v30, 0.0 }
 0x233   : > { %v2229_v35 = vsel %vm1795_vm8, %v2177_v48, 0.0  ;;  %v2262_v48 = vld [vmem:[%s4628_s5] sm:$0x1] }
 0x234   : > { %v2230_v33 = vadd.f32 %v2229_v35, %v2228_v37 }
 0x236   : > { %v2232_v9 = vadd.f32 %v2231_v16, %v2230_v33 }
 0x238   : > { %v2234_v42 = vadd.f32 %v2233_v39, %v2232_v9 }
 0x249   : > { %v2691_v44 = vpop.f32.mrb[4].mxu1 }
 0x24a   : > { %v2111_v45 = vmul.f32 %v2691_v44, %v4439_v5  ;;  %v2047_v13 = vpop.f32.mrb[5].mxu1 }
 0x24b   : > { %v2109_v34 = vmul.f32 %v4439_v5, %v2047_v13  ;;  %v2692_v0 = vpop.f32.mrb[6].mxu1 }
 0x24c   : > { %v2112_v7 = vmul.f32 %v2692_v0, %v4439_v5  ;;  %v2050_v24 = vpop.f32.mrb[7].mxu1  ;;  %v2150_v50 = vadd.f32 %v4452_v49, %v2111_v45 }
 0x24d   : > { %v2148_v41 = vadd.f32 %v4452_v49, %v2109_v34  ;;  %v2110_v53 = vmul.f32 %v4439_v5, %v2050_v24 }
 0x24e   : > { %v2151_v54 = vadd.f32 %v4452_v49, %v2112_v7  ;;  %v2182_v18 = vmax.f32 %v2150_v50, 0.0 }
 0x24f   : > { %v2180_v31 = vmax.f32 %v2148_v41, 0.0  ;;  %v2149_v52 = vadd.f32 %v4452_v49, %v2110_v53 }
 0x250   : > { %v2183_v47 = vmax.f32 %v2151_v54, 0.0  ;;  %v2239_v59 = vsel %vm1795_vm8, %v2182_v18, 0.0 }
 0x251   : > { %v2235_v56 = vsel %vm1795_vm8, %v2180_v31, 0.0  ;;  %v2181_v57 = vmax.f32 %v2149_v52, 0.0 }
 0x252   : > { %v2236_v46 = vadd.f32 %v2235_v56, %v2234_v42  ;;  %v2241_v61 = vsel %vm1795_vm8, %v2183_v47, 0.0 }
 0x253   : > { %v2237_v28 = vsel %vm1795_vm8, %v2181_v57, 0.0 }
 0x254   : > { %v2238_v58 = vadd.f32 %v2237_v28, %v2236_v46 }
 0x256   : > { %v2240_v27 = vadd.f32 %v2239_v59, %v2238_v58 }
 0x258   : > { %v2242_v62 = vadd.f32 %v2241_v61, %v2240_v27 }
 0x266   : > { %v2695_v43 = vpop.f32.mrb[8].mxu1 }
 0x267   : > { %v2115_v32 = vmul.f32 %v2695_v43, %v4439_v5  ;;  %v2063_v38 = vpop.f32.mrb[9].mxu1 }
 0x268   : > { %v2113_v2 = vmul.f32 %v4439_v5, %v2063_v38  ;;  %v2696_v36 = vpop.f32.mrb[10].mxu1 }
 0x269   : > { %v2116_v15 = vmul.f32 %v2696_v36, %v4439_v5  ;;  %v2066_v1 = vpop.f32.mrb[11].mxu1  ;;  %v2154_v3 = vadd.f32 %v4452_v49, %v2115_v32 }
 0x26a   : > { %v2152_v4 = vadd.f32 %v4452_v49, %v2113_v2  ;;  %v2114_v6 = vmul.f32 %v4439_v5, %v2066_v1 }
 0x26b   : > { %v2155_v63 = vadd.f32 %v4452_v49, %v2116_v15  ;;  %v2186_v40 = vmax.f32 %v2154_v3, 0.0 }
 0x26c   : > { %v2184_v25 = vmax.f32 %v2152_v4, 0.0  ;;  %v2153_v8 = vadd.f32 %v4452_v49, %v2114_v6 }
 0x26d   : > { %v2187_v11 = vmax.f32 %v2155_v63, 0.0  ;;  %v2247_v60 = vsel %vm1795_vm8, %v2186_v40, 0.0 }
 0x26e   : > { %v2243_v10 = vsel %vm1795_vm8, %v2184_v25, 0.0  ;;  %v2185_v12 = vmax.f32 %v2153_v8, 0.0 }
 0x26f   : > { %v2244_v51 = vadd.f32 %v2243_v10, %v2242_v62  ;;  %v2249_v19 = vsel %vm1795_vm8, %v2187_v11, 0.0 }
 0x270   : > { %v2245_v14 = vsel %vm1795_vm8, %v2185_v12, 0.0 }
 0x271   : > { %v2246_v17 = vadd.f32 %v2245_v14, %v2244_v51 }
 0x273   : > { %v2248_v26 = vadd.f32 %v2247_v60, %v2246_v17 }
 0x275   : > { %v2250_v5 = vadd.f32 %v2249_v19, %v2248_v26 }
 0x277   : > { %v2251_v20 = vrot.slane %v2250_v5, 4 }
 0x279   : > { %v2252_v21 = vadd.f32 %v2251_v20, %v2250_v5 }
 0x27b   : > { %v2253_v22 = vrot.slane %v2252_v21, 2 }
 0x27d   : > { %v2254_v49 = vadd.f32 %v2253_v22, %v2252_v21 }
 0x27f   : > { %v2255_v23 = vrot.slane %v2254_v49, 1 }
 0x281   : > { %v2256_v55 = vadd.f32 %v2255_v23, %v2254_v49 }
 0x283   : > { %v2257_v29 = vmul.f32 0.00390625, %v2256_v55 }
 0x285   : > { %2706 = vmatmul.mubr.msk.f32.vlgmr.msra.gmra.mrb[12].mxu1 %vm1795_vm8, %v2257_v29 }
 0x358   : > { %v2332_v37 = vpop.f32.mrb[12].mxu1 }
 0x359   : > { %v2333_v30 = vadd.f32 %v2332_v37, %v2262_v48  ;;  %v2707_v35 = vpop.f32.mrb[13].mxu1 }
 0x35b   : > { %v2631_v33 = vmul.f32 -1.442695, %v2333_v30 }
 0x35d   : > { %3416 = vpow2.f32 %v2631_v33 }
 0x367   : > { %v3417_v16 = vpop.eup %3416 }
 0x368   : > { %v2339_v9 = vadd.f32 1.0, %v3417_v16 }
 0x36a   : > { %3418 = vrcp.f32 %v2339_v9 }
 0x374   : > { %v3419_v39 = vpop.eup %3418 }
 0x375   : > { %2343 = vst.msk [vmem:[%s243_s14] sm:$0x1] %vm2342_vm11, %v3419_v39 }
 0x376   : > { %3436 = shalt.err (!%p3433_p3)
}
 0x377   : > { %s3437_s29 = scalar_lea.hbm %s4581_s18, 16  ;;  %s3441_s11 = scalar_lea.hbm %s4629_s6, 32 }
 0x378   : > { %p3438_p4 = scmp.ne.s32.totalorder %s4581_s18, %s3437_s29  ;;  %p3442_p9 = scmp.lt.u32.totalorder %s4581_s18, %s4629_s6 }
 0x379   : > { %p3443_p10 = scmp.lt.u32.totalorder %s3441_s11, %s3437_s29  ;;  %p3445_p12 = scmp.lt.u32.totalorder %s3437_s29, %s4581_s18 }
 0x37a   : > { %p3439_p7 = pnand %p3438_p4, %p3572_p5 }
 0x37b   : > { %p3444_p11 = por %p3443_p10, %p3442_p9 }
 0x37c   : > { %p3440_p8 = pneg %p3439_p7 }
 0x37d   : > { %p3446_p13 = por %p3445_p12, %p3444_p11 }
 0x37f   : > { %p3447_p0 = pnand %p3446_p13, %p3440_p8 }
 0x381   : > { %3450 = shalt.err (!%p3447_p0)
}
 0x382   : > { %2723 = dma.vmem_to_hbm [thread:$0]  (%p3572_p5), %s4583_s15, 16, %s4581_s18, %s2345_s19  }
 0x383 PF: > { %p2729_p1 = scmp.ge.s32.totalorder %s3485_s24, 2  ;;  %s2369_s14 = sand.u32 1, %s3473_s21  }
 0x384   : > { %s2370_s16 = scalar_lea.sflag [#allocation3], %s2369_s14 }
 0x385   : > { %p2726_p2 = pnand %p2729_p1, %p3576_p6 }
 0x387   : > { %3468 = dma.done.wait (!%p2726_p2), %s2370_s16, 16  }
 0x388   : > { %3470 = vsyncadd (!%p2726_p2), %s2370_s16, 4294967280  ;;  %p16_p3 = scmp.ge.s32.totalorder %s3559_s27, 4   ;;  %s4632_s21 = smov %s3477_s22 }
 0x389   : > { %s4633_s22 = smov %s3481_s23  ;;  %s4634_s23 = smov %s3570_s30 }
 0x38a   : > { %s4635_s24 = smov %s3559_s27  ;;  %18 = sbr.rel (!%p16_p3) target bundleno = 3 (0x3), region = 81 }
 0x391   :  { %2374 = vsyncpa [#allocation3], 1 }
 0x392   :  { %2376 = vsyncpa [#allocation3 + $0x1], 1 }

</bundles_post_ra>
